<compile_context>
chip_gen: v7x
topology: tpu7x:2x2x1
jax: 0.10.0
libtpu: 0.0.40
codegen_flags: <defaults>
</compile_context>

<pallas_src>
import math
import jax
import jax.numpy as jnp
from jax.experimental import pallas as pl
from jax.experimental.pallas import tpu as pltpu

# ---------------- config (small shapes consistent with the module) ----------------
BATCH = 2
NUM_INPUTS = 8            # token_size == seq length == number of scalar features
NUM_OUTPUT = 4
HIDDEN = 32               # d_model / hidden_size
FFD = 64                  # dim_feedforward and AttentionPooling hidden
NUM_LAYERS = 2            # transformer encoder layers
NUM_EMB_LAYERS = 2        # per-feature embedding MLP depth (2 linears)
NUM_HEADS = 4
NUM_VOTES = 3
HEAD_DIM = HIDDEN // NUM_HEADS
LN_EPS = 1e-5
FLAT = NUM_INPUTS * HIDDEN
BS = BATCH * NUM_INPUTS
VF = NUM_VOTES * FFD
VO = NUM_VOTES * NUM_OUTPUT
HS = NUM_HEADS * NUM_INPUTS        # expanded key axis (head-major)

WIDE_W = FLAT                      # 256 lanes
NARROW_W = 128                     # 128 lanes


# ---------------- slab layouts (static, module-level) ----------------
def _round8(n):
    return ((n + 7) // 8) * 8


def _make_layout(entries):
    layout = {}
    off = 0
    for name, r, c in entries:
        layout[name] = (off, r, c)
        off += _round8(r)
    return layout, off


_WIDE_ENTRIES = [
    ('emb_w1e', NUM_INPUTS, FLAT),     # per-feature first linears, expanded
    ('emb_b1e', BS, FLAT),             # masked first bias, tiled over batch
    ('selm', BS, FLAT),                # flatten selector mask
    ('wall', FLAT, VF + FFD),          # expert first linears + voting first linear
    ('ball', 1, VF + FFD),
    ('w2bd', VF, VF),                  # block-diagonal expert second linears
    ('b2bd', 1, VF),
]

_NARROW_ENTRIES = [
    ('emb_w2f', FLAT, HIDDEN),         # per-feature second linears, stacked
    ('emb_b2pe', BS, HIDDEN),          # second bias + positional encoding, tiled
]
for _l in range(NUM_LAYERS):
    _NARROW_ENTRIES += [
        (f'wq{_l}', HIDDEN, HIDDEN), (f'bq{_l}', 1, HIDDEN),
        (f'wk{_l}', HIDDEN, HIDDEN), (f'bk{_l}', 1, HIDDEN),
        (f'wv{_l}', HIDDEN, HIDDEN), (f'bv{_l}', 1, HIDDEN),
        (f'wo{_l}', HIDDEN, HIDDEN), (f'bo{_l}', 1, HIDDEN),
        (f'ln1w{_l}', 1, HIDDEN), (f'ln1b{_l}', 1, HIDDEN),
        (f'w1{_l}', HIDDEN, FFD), (f'b1{_l}', 1, FFD),
        (f'w2{_l}', FFD, HIDDEN), (f'b2{_l}', 1, HIDDEN),
        (f'ln2w{_l}', 1, HIDDEN), (f'ln2b{_l}', 1, HIDDEN),
    ]
_NARROW_ENTRIES += [
    ('head_mask', HS, HIDDEN),         # mask feature dim d to head j//S
    ('head_ones', HS, HS),             # per-head group-sum matrix
    ('bsel', BATCH, BS),               # batch row-sum selector
    ('w3bd', VF, VO),                  # block-diagonal expert third linears
    ('b3bd', 1, VO),
    ('wv2e', VF + FFD, NUM_VOTES),     # voting second linear, zero-extended rows
    ('bv2', 1, NUM_VOTES),
    ('vexp_m', NUM_VOTES, VO),         # votes -> repeated over outputs
    ('fold_m', VO, NUM_OUTPUT),        # sum per-vote outputs
]

WIDE_LAYOUT, WIDE_ROWS = _make_layout(_WIDE_ENTRIES)
NARROW_LAYOUT, NARROW_ROWS = _make_layout(_NARROW_ENTRIES)


# ---------------- shared math helpers ----------------
def _layer_norm(x2d, w, b):
    # two-pass version (reference)
    mu = jnp.mean(x2d, axis=-1, keepdims=True)
    var = jnp.mean((x2d - mu) ** 2, axis=-1, keepdims=True)
    return (x2d - mu) * jax.lax.rsqrt(var + LN_EPS) * w + b


def _ln_onepass(x2d, w, b):
    # kernel version: independent sum / sum-of-squares reductions (better ILP)
    n = x2d.shape[-1]
    s1 = jnp.sum(x2d, axis=-1, keepdims=True)
    s2 = jnp.sum(x2d * x2d, axis=-1, keepdims=True)
    mu = s1 * (1.0 / n)
    var = s2 * (1.0 / n) - mu * mu
    return (x2d - mu) * jax.lax.rsqrt(var + LN_EPS) * w + b


# ---------------- single fused Pallas kernel ----------------
def fused_forward_kernel(x_oh_ref, wide_ref, nar_ref, o_ref):
    f32 = jnp.float32

    def W(name):
        off, r, c = WIDE_LAYOUT[name]
        return wide_ref[pl.ds(off, r), pl.ds(0, c)]

    def N(name):
        off, r, c = NARROW_LAYOUT[name]
        return nar_ref[pl.ds(off, r), pl.ds(0, c)]

    def dot(a, b):
        return jnp.dot(a, b, preferred_element_type=f32)

    # ---------- per-feature embedding MLP + positional encoding (2 dense matmuls) ----------
    h1e = jnp.maximum(dot(x_oh_ref[...], W('emb_w1e')) + W('emb_b1e'), 0.0)   # [B*S, FLAT]
    x2 = dot(h1e, N('emb_w2f')) + N('emb_b2pe')                               # [B*S, H]

    head_mask = N('head_mask')   # [HS, H]
    head_ones = N('head_ones')   # [HS, HS]

    # ---------- transformer encoder layers (post-LN, relu, batch_first) ----------
    for l in range(NUM_LAYERS):
        # separate lane-aligned Q/K/V matmuls (1/sqrt(head_dim) folded into Wq/bq)
        q = dot(x2, N(f'wq{l}')) + N(f'bq{l}')                                # [B*S, H]
        k = dot(x2, N(f'wk{l}')) + N(f'bk{l}')
        v = dot(x2, N(f'wv{l}')) + N(f'bv{l}')
        q3 = q.reshape(BATCH, NUM_INPUTS, HIDDEN)
        k3 = k.reshape(BATCH, NUM_INPUTS, HIDDEN)
        v3 = v.reshape(BATCH, NUM_INPUTS, HIDDEN)

        # expand keys/values along a head-major key axis j = h*S + k, masked to head h,
        # so ONE batched einsum computes all heads' scores / contexts.
        kexp = jnp.concatenate([k3] * NUM_HEADS, axis=1) * head_mask          # [B, HS, H]
        vexp = jnp.concatenate([v3] * NUM_HEADS, axis=1) * head_mask          # [B, HS, H]

        s = jnp.einsum('bqd,bjd->bqj', q3, kexp, preferred_element_type=f32)  # [B, S, HS]
        s2 = s.reshape(BS, HS)
        # a per-row constant cancels in softmax, so a single global row max suffices
        s2 = s2 - jnp.max(s2, axis=-1, keepdims=True)
        p2 = jnp.exp(s2)
        denom = dot(p2, head_ones)                                            # per-head sums
        p2 = p2 * pl.reciprocal(denom, approx=True)
        pn = p2.reshape(BATCH, NUM_INPUTS, HS)

        ctx = jnp.einsum('bqj,bje->bqe', pn, vexp, preferred_element_type=f32)  # [B, S, H]
        attn = dot(ctx.reshape(BS, HIDDEN), N(f'wo{l}')) + N(f'bo{l}')

        h1 = _ln_onepass(x2 + attn, N(f'ln1w{l}'), N(f'ln1b{l}'))
        ff = jnp.maximum(dot(h1, N(f'w1{l}')) + N(f'b1{l}'), 0.0)
        ff = dot(ff, N(f'w2{l}')) + N(f'b2{l}')
        x2 = _ln_onepass(h1 + ff, N(f'ln2w{l}'), N(f'ln2b{l}'))               # [B*S, H]

    # ---------- Flatten [B*S,H] -> [B,FLAT] via selector mask + row-sum matmuls ----------
    x_cat = jnp.concatenate([x2] * NUM_INPUTS, axis=1)                        # [B*S, FLAT]
    p_all = dot(x_cat * W('selm'), W('wall'))                                 # [B*S, VF+FFD]
    y_all = jnp.maximum(dot(N('bsel'), p_all) + W('ball'), 0.0)               # [B, VF+FFD]

    # voting softmax over votes (wv2e rows for the expert block are zero -> no lane slice)
    logits = dot(y_all, N('wv2e')) + N('bv2')                                 # [B, V]
    logits = logits - jnp.max(logits, axis=-1, keepdims=True)
    e = jnp.exp(logits)
    votes = e * pl.reciprocal(jnp.sum(e, axis=-1, keepdims=True), approx=True)

    # stacked expert MLPs (block-diagonal second/third linears)
    h1a = y_all[:, 0:VF]                                                      # offset-0 slice
    h2a = jnp.maximum(dot(h1a, W('w2bd')) + W('b2bd'), 0.0)                   # [B, VF]
    h3a = dot(h2a, N('w3bd')) + N('b3bd')                                     # [B, VO]

    # weighted sum over votes via two tiny matmuls (no slice/broadcast loop)
    vexp_votes = dot(votes, N('vexp_m'))                                      # [B, VO]
    o_ref[...] = dot(h3a * vexp_votes, N('fold_m'))                           # [B, O]


# ---------------- parameters ----------------
def positional_encoding(seq_len, d_model):
    pos = jnp.arange(seq_len, dtype=jnp.float32)[:, None]
    div = jnp.exp(jnp.arange(0, d_model, 2, dtype=jnp.float32)
                  * (-math.log(10000.0) / d_model))
    pe = jnp.zeros((seq_len, d_model), jnp.float32)
    pe = pe.at[:, 0::2].set(jnp.sin(pos * div))
    pe = pe.at[:, 1::2].set(jnp.cos(pos * div))
    return pe


def init_params(key):
    keys = iter(jax.random.split(key, 48))

    def nrm(shape, scale=0.05):
        return scale * jax.random.normal(next(keys), shape, jnp.float32)

    p = {}
    # Embedding: per-feature MLPBlock(1 -> HIDDEN -> HIDDEN), num_emb_layers == 2
    p['emb_w1'] = nrm((NUM_INPUTS, HIDDEN))          # Linear(1, H).weight[:, 0] per feature
    p['emb_b1'] = nrm((NUM_INPUTS, HIDDEN))
    p['emb_w2'] = nrm((NUM_INPUTS, HIDDEN, HIDDEN))  # Linear(H, H).weight [out, in] per feature
    p['emb_b2'] = nrm((NUM_INPUTS, HIDDEN))

    layers = []
    for _ in range(NUM_LAYERS):
        layers.append(dict(
            wqkv=nrm((3 * HIDDEN, HIDDEN)), bqkv=nrm((1, 3 * HIDDEN)),
            wo=nrm((HIDDEN, HIDDEN)), bo=nrm((1, HIDDEN)),
            ln1w=jnp.ones((1, HIDDEN), jnp.float32), ln1b=jnp.zeros((1, HIDDEN), jnp.float32),
            w1=nrm((FFD, HIDDEN)), b1=nrm((1, FFD)),
            w2=nrm((HIDDEN, FFD)), b2=nrm((1, HIDDEN)),
            ln2w=jnp.ones((1, HIDDEN), jnp.float32), ln2b=jnp.zeros((1, HIDDEN), jnp.float32),
        ))
    p['layers'] = layers

    # AttentionPooling (PyTorch [out, in] convention)
    p['ap_w1'] = nrm((NUM_VOTES, FFD, FLAT))
    p['ap_b1'] = nrm((NUM_VOTES, FFD))
    p['ap_w2'] = nrm((NUM_VOTES, FFD, FFD))
    p['ap_b2'] = nrm((NUM_VOTES, FFD))
    p['ap_w3'] = nrm((NUM_VOTES, NUM_OUTPUT, FFD))
    p['ap_b3'] = nrm((NUM_VOTES, NUM_OUTPUT))
    p['ap_wv1'] = nrm((FFD, FLAT))
    p['ap_bv1'] = nrm((1, FFD))
    p['ap_wv2'] = nrm((NUM_VOTES, FFD))
    p['ap_bv2'] = nrm((1, NUM_VOTES))
    return p


# ---------------- one-time weight re-packing into two slabs (hoisted out of the per-call path) --
def pack_params(params):
    vals_w, vals_n = {}, {}
    pe = positional_encoding(NUM_INPUTS, HIDDEN)
    eye_s = jnp.eye(NUM_INPUTS, dtype=jnp.float32)
    feat_mask = jnp.repeat(eye_s, HIDDEN, axis=1)                 # [S, FLAT]

    # --- embedding: per-feature Linear(1,H) / Linear(H,H) expanded to dense matrices ---
    vals_w['emb_w1e'] = jnp.tile(params['emb_w1'], (1, NUM_INPUTS)) * feat_mask
    vals_w['emb_b1e'] = jnp.tile(jnp.tile(params['emb_b1'], (1, NUM_INPUTS)) * feat_mask,
                                 (BATCH, 1))
    vals_n['emb_w2f'] = jnp.transpose(params['emb_w2'], (0, 2, 1)).reshape(FLAT, HIDDEN)
    vals_n['emb_b2pe'] = jnp.tile(params['emb_b2'] + pe, (BATCH, 1))

    # --- encoder: split QKV, fold Q scale, pre-transpose to [in, out] ---
    scale = 1.0 / math.sqrt(HEAD_DIM)
    for l, lp in enumerate(params['layers']):
        wq, wk, wv = (lp['wqkv'][0:HIDDEN], lp['wqkv'][HIDDEN:2 * HIDDEN],
                      lp['wqkv'][2 * HIDDEN:3 * HIDDEN])
        bq, bk, bv = (lp['bqkv'][:, 0:HIDDEN], lp['bqkv'][:, HIDDEN:2 * HIDDEN],
                      lp['bqkv'][:, 2 * HIDDEN:3 * HIDDEN])
        vals_n[f'wq{l}'] = (wq * scale).T
        vals_n[f'bq{l}'] = bq * scale
        vals_n[f'wk{l}'] = wk.T
        vals_n[f'bk{l}'] = bk
        vals_n[f'wv{l}'] = wv.T
        vals_n[f'bv{l}'] = bv
        vals_n[f'wo{l}'] = lp['wo'].T
        vals_n[f'bo{l}'] = lp['bo']
        vals_n[f'ln1w{l}'] = lp['ln1w']
        vals_n[f'ln1b{l}'] = lp['ln1b']
        vals_n[f'w1{l}'] = lp['w1'].T
        vals_n[f'b1{l}'] = lp['b1']
        vals_n[f'w2{l}'] = lp['w2'].T
        vals_n[f'b2{l}'] = lp['b2']
        vals_n[f'ln2w{l}'] = lp['ln2w']
        vals_n[f'ln2b{l}'] = lp['ln2b']

    # --- attention head-expansion constants ---
    head_eye = jnp.eye(NUM_HEADS, dtype=jnp.float32)
    vals_n['head_mask'] = jnp.repeat(jnp.repeat(head_eye, NUM_INPUTS, axis=0),
                                     HEAD_DIM, axis=1)            # [HS, H]
    vals_n['head_ones'] = jnp.repeat(jnp.repeat(head_eye, NUM_INPUTS, axis=0),
                                     NUM_INPUTS, axis=1)          # [HS, HS]

    # --- attention pooling: flatten selectors + stacked / block-diagonal expert weights ---
    vals_w['selm'] = jnp.tile(feat_mask, (BATCH, 1))
    vals_n['bsel'] = jnp.repeat(jnp.eye(BATCH, dtype=jnp.float32), NUM_INPUTS, axis=1)
    w1s_t = jnp.transpose(params['ap_w1'], (2, 0, 1)).reshape(FLAT, VF)
    vals_w['wall'] = jnp.concatenate([w1s_t, params['ap_wv1'].T], axis=1)     # [FLAT, VF+FFD]
    vals_w['ball'] = jnp.concatenate([params['ap_b1'].reshape(1, VF), params['ap_bv1']], axis=1)
    vote_mask = jnp.repeat(jnp.eye(NUM_VOTES, dtype=jnp.float32), FFD, axis=1)
    out_mask = jnp.repeat(jnp.eye(NUM_VOTES, dtype=jnp.float32), NUM_OUTPUT, axis=1)
    vals_w['w2bd'] = (jnp.tile(jnp.transpose(params['ap_w2'], (0, 2, 1)), (1, 1, NUM_VOTES))
                      * vote_mask[:, None, :]).reshape(VF, VF)
    vals_w['b2bd'] = params['ap_b2'].reshape(1, VF)
    vals_n['w3bd'] = (jnp.tile(jnp.transpose(params['ap_w3'], (0, 2, 1)), (1, 1, NUM_VOTES))
                      * out_mask[:, None, :]).reshape(VF, VO)
    vals_n['b3bd'] = params['ap_b3'].reshape(1, VO)
    vals_n['wv2e'] = jnp.concatenate(
        [jnp.zeros((VF, NUM_VOTES), jnp.float32), params['ap_wv2'].T], axis=0)
    vals_n['bv2'] = params['ap_bv2']
    vals_n['vexp_m'] = out_mask                                   # [V, VO]
    vals_n['fold_m'] = jnp.tile(jnp.eye(NUM_OUTPUT, dtype=jnp.float32), (NUM_VOTES, 1))

    def build(layout, rows, width, vals):
        slab = jnp.zeros((rows, width), jnp.float32)
        for name, (off, r, c) in layout.items():
            v = jnp.asarray(vals[name], jnp.float32).reshape(r, c)
            slab = slab.at[off:off + r, 0:c].set(v)
        return slab

    wide = build(WIDE_LAYOUT, WIDE_ROWS, WIDE_W, vals_w)
    narrow = build(NARROW_LAYOUT, NARROW_ROWS, NARROW_W, vals_n)
    return wide, narrow


# ---------------- per-call wrapper: only builds x_oh, then one pallas_call ----------------
@jax.jit
def transformer_block_forward(x, wide_slab, narrow_slab):
    eye_s = jnp.eye(NUM_INPUTS, dtype=jnp.float32)
    x_oh = (x[:, :, None] * eye_s[None, :, :]).reshape(BS, NUM_INPUTS)   # [B*S, S]
    vmem = pltpu.MemorySpace.VMEM
    # Entire forward pass in one launch; whole arrays resident in VMEM (~1.3 MiB total),
    # so no grid / tiling / multi-buffering is used on purpose.
    return pl.pallas_call(
        fused_forward_kernel,
        out_shape=jax.ShapeDtypeStruct((BATCH, NUM_OUTPUT), jnp.float32),
        in_specs=[pl.BlockSpec(memory_space=vmem)] * 3,
        out_specs=pl.BlockSpec(memory_space=vmem),
    )(x_oh, wide_slab, narrow_slab)


# ---------------- pure-JAX reference (mirrors the PyTorch module) ----------------
def reference_forward(x, params):
    pe = positional_encoding(NUM_INPUTS, HIDDEN)
    h = jnp.maximum(x[:, :, None] * params['emb_w1'][None] + params['emb_b1'][None], 0.0)
    y = jnp.einsum('bsi,soi->bso', h, params['emb_w2']) + params['emb_b2'][None] + pe[None]
    scale = 1.0 / math.sqrt(HEAD_DIM)
    for lp in params['layers']:
        x2 = y.reshape(BS, HIDDEN)
        qkv = (x2 @ lp['wqkv'].T + lp['bqkv']).reshape(BATCH, NUM_INPUTS, 3 * HIDDEN)
        q, k, v = qkv[..., 0:HIDDEN], qkv[..., HIDDEN:2 * HIDDEN], qkv[..., 2 * HIDDEN:]
        heads = []
        for hh in range(NUM_HEADS):
            sl = slice(hh * HEAD_DIM, (hh + 1) * HEAD_DIM)
            s = jnp.einsum('bqd,bkd->bqk', q[..., sl] * scale, k[..., sl])
            heads.append(jnp.einsum('bqk,bkd->bqd', jax.nn.softmax(s, axis=-1), v[..., sl]))
        ctx = jnp.concatenate(heads, axis=-1).reshape(BS, HIDDEN)
        attn = ctx @ lp['wo'].T + lp['bo']
        h1 = _layer_norm(x2 + attn, lp['ln1w'], lp['ln1b'])
        ff = jnp.maximum(h1 @ lp['w1'].T + lp['b1'], 0.0) @ lp['w2'].T + lp['b2']
        y = _layer_norm(h1 + ff, lp['ln2w'], lp['ln2b']).reshape(BATCH, NUM_INPUTS, HIDDEN)
    flat = y.reshape(BATCH, FLAT)
    v1 = jnp.maximum(flat @ params['ap_wv1'].T + params['ap_bv1'], 0.0)
    votes = jax.nn.softmax(v1 @ params['ap_wv2'].T + params['ap_bv2'], axis=1)
    out = jnp.zeros((BATCH, NUM_OUTPUT), jnp.float32)
    for vi in range(NUM_VOTES):
        h1v = jnp.maximum(flat @ params['ap_w1'][vi].T + params['ap_b1'][vi], 0.0)
        h2v = jnp.maximum(h1v @ params['ap_w2'][vi].T + params['ap_b2'][vi], 0.0)
        out = out + (h2v @ params['ap_w3'][vi].T + params['ap_b3'][vi]) * votes[:, vi:vi + 1]
    return out


if __name__ == "__main__":
    key = jax.random.PRNGKey(0)
    k_x, k_p = jax.random.split(key)
    x = jax.random.normal(k_x, (BATCH, NUM_INPUTS), jnp.float32)
    params = init_params(k_p)

    # one-time weight packing (hoisted out of the per-call path)
    wide_slab, narrow_slab = jax.block_until_ready(pack_params(params))

    out = transformer_block_forward(x, wide_slab, narrow_slab)
    out = jax.block_until_ready(out)
    assert out.shape == (BATCH, NUM_OUTPUT)
    assert bool(jnp.all(jnp.isfinite(out)))

    ref = jax.block_until_ready(jax.jit(reference_forward)(x, params))
    assert bool(jnp.allclose(out, ref, rtol=2e-2, atol=2e-2)), (out, ref)

    print("KERNEL_OK")
</pallas_src>

<mosaic_0001>
module attributes {stable_mosaic.version = 11 : i64} {
  func.func @fused_forward_kernel(%arg0: memref<16x8xf32, #tpu.memory_space<vmem>>, %arg1: memref<504x256xf32, #tpu.memory_space<vmem>>, %arg2: memref<1440x128xf32, #tpu.memory_space<vmem>>, %arg3: memref<2x4xf32, #tpu.memory_space<vmem>>) attributes {dimension_semantics = [], scalar_prefetch = 0 : i64, scratch_operands = 0 : i64, tpu.core_type = #tpu.core_type<tc>} {
    %c0 = arith.constant 0 : index
    %c0_0 = arith.constant 0 : index
    %0 = vector.load %arg0[%c0, %c0_0] : memref<16x8xf32, #tpu.memory_space<vmem>>, vector<16x8xf32>
    %c0_1 = arith.constant 0 : index
    %c0_2 = arith.constant 0 : index
    %1 = vector.load %arg1[%c0_1, %c0_2] : memref<504x256xf32, #tpu.memory_space<vmem>>, vector<8x256xf32>
    %cst = arith.constant dense<0.000000e+00> : vector<16x256xf32>
    %2 = tpu.matmul %0, %1, %cst {dimension_numbers = #tpu.dot_dimension_numbers<[1], [0], [0], [1], [0, 0, 1, 1], [], []>} : vector<16x8xf32>, vector<8x256xf32>, vector<16x256xf32> -> vector<16x256xf32>
    %c8 = arith.constant 8 : index
    %c0_3 = arith.constant 0 : index
    %3 = vector.load %arg1[%c8, %c0_3] : memref<504x256xf32, #tpu.memory_space<vmem>>, vector<16x256xf32>
    %4 = arith.addf %2, %3 : vector<16x256xf32>
    %cst_4 = arith.constant 0.000000e+00 : f32
    %5 = vector.broadcast %cst_4 : f32 to vector<16x256xf32>
    %6 = arith.maximumf %4, %5 : vector<16x256xf32>
    %c0_5 = arith.constant 0 : index
    %c0_6 = arith.constant 0 : index
    %7 = vector.load %arg2[%c0_5, %c0_6] : memref<1440x128xf32, #tpu.memory_space<vmem>>, vector<256x32xf32>
    %cst_7 = arith.constant dense<0.000000e+00> : vector<16x32xf32>
    %8 = tpu.matmul %6, %7, %cst_7 {dimension_numbers = #tpu.dot_dimension_numbers<[1], [0], [0], [1], [0, 0, 1, 1], [], []>} : vector<16x256xf32>, vector<256x32xf32>, vector<16x32xf32> -> vector<16x32xf32>
    %c256 = arith.constant 256 : index
    %c0_8 = arith.constant 0 : index
    %9 = vector.load %arg2[%c256, %c0_8] : memref<1440x128xf32, #tpu.memory_space<vmem>>, vector<16x32xf32>
    %10 = arith.addf %8, %9 : vector<16x32xf32>
    %c880 = arith.constant 880 : index
    %c0_9 = arith.constant 0 : index
    %11 = vector.load %arg2[%c880, %c0_9] : memref<1440x128xf32, #tpu.memory_space<vmem>>, vector<32x32xf32>
    %c912 = arith.constant 912 : index
    %c0_10 = arith.constant 0 : index
    %12 = vector.load %arg2[%c912, %c0_10] : memref<1440x128xf32, #tpu.memory_space<vmem>>, vector<32x32xf32>
    %c272 = arith.constant 272 : index
    %c0_11 = arith.constant 0 : index
    %13 = vector.load %arg2[%c272, %c0_11] : memref<1440x128xf32, #tpu.memory_space<vmem>>, vector<32x32xf32>
    %cst_12 = arith.constant dense<0.000000e+00> : vector<16x32xf32>
    %14 = tpu.matmul %10, %13, %cst_12 {dimension_numbers = #tpu.dot_dimension_numbers<[1], [0], [0], [1], [0, 0, 1, 1], [], []>} : vector<16x32xf32>, vector<32x32xf32>, vector<16x32xf32> -> vector<16x32xf32>
    %c304 = arith.constant 304 : index
    %c0_13 = arith.constant 0 : index
    %15 = vector.load %arg2[%c304, %c0_13] : memref<1440x128xf32, #tpu.memory_space<vmem>>, vector<1x32xf32>
    %16 = vector.broadcast %15 : vector<1x32xf32> to vector<16x32xf32>
    %17 = arith.addf %14, %16 : vector<16x32xf32>
    %c312 = arith.constant 312 : index
    %c0_14 = arith.constant 0 : index
    %18 = vector.load %arg2[%c312, %c0_14] : memref<1440x128xf32, #tpu.memory_space<vmem>>, vector<32x32xf32>
    %cst_15 = arith.constant dense<0.000000e+00> : vector<16x32xf32>
    %19 = tpu.matmul %10, %18, %cst_15 {dimension_numbers = #tpu.dot_dimension_numbers<[1], [0], [0], [1], [0, 0, 1, 1], [], []>} : vector<16x32xf32>, vector<32x32xf32>, vector<16x32xf32> -> vector<16x32xf32>
    %c344 = arith.constant 344 : index
    %c0_16 = arith.constant 0 : index
    %20 = vector.load %arg2[%c344, %c0_16] : memref<1440x128xf32, #tpu.memory_space<vmem>>, vector<1x32xf32>
    %21 = vector.broadcast %20 : vector<1x32xf32> to vector<16x32xf32>
    %22 = arith.addf %19, %21 : vector<16x32xf32>
    %c352 = arith.constant 352 : index
    %c0_17 = arith.constant 0 : index
    %23 = vector.load %arg2[%c352, %c0_17] : memref<1440x128xf32, #tpu.memory_space<vmem>>, vector<32x32xf32>
    %cst_18 = arith.constant dense<0.000000e+00> : vector<16x32xf32>
    %24 = tpu.matmul %10, %23, %cst_18 {dimension_numbers = #tpu.dot_dimension_numbers<[1], [0], [0], [1], [0, 0, 1, 1], [], []>} : vector<16x32xf32>, vector<32x32xf32>, vector<16x32xf32> -> vector<16x32xf32>
    %c384 = arith.constant 384 : index
    %c0_19 = arith.constant 0 : index
    %25 = vector.load %arg2[%c384, %c0_19] : memref<1440x128xf32, #tpu.memory_space<vmem>>, vector<1x32xf32>
    %26 = vector.broadcast %25 : vector<1x32xf32> to vector<16x32xf32>
    %27 = arith.addf %24, %26 : vector<16x32xf32>
    %28 = vector.shape_cast %17 : vector<16x32xf32> to vector<2x8x32xf32>
    %29 = vector.shape_cast %22 : vector<16x32xf32> to vector<2x8x32xf32>
    %30 = vector.shape_cast %27 : vector<16x32xf32> to vector<2x8x32xf32>
    %31 = tpu.concatenate %29, %29, %29, %29 in 1 : vector<2x8x32xf32>, vector<2x8x32xf32>, vector<2x8x32xf32>, vector<2x8x32xf32> -> vector<2x32x32xf32>
    %32 = vector.shape_cast %11 : vector<32x32xf32> to vector<1x32x32xf32>
    %33 = vector.broadcast %32 : vector<1x32x32xf32> to vector<2x32x32xf32>
    %34 = arith.mulf %31, %33 : vector<2x32x32xf32>
    %35 = tpu.concatenate %30, %30, %30, %30 in 1 : vector<2x8x32xf32>, vector<2x8x32xf32>, vector<2x8x32xf32>, vector<2x8x32xf32> -> vector<2x32x32xf32>
    %36 = vector.shape_cast %11 : vector<32x32xf32> to vector<1x32x32xf32>
    %37 = vector.broadcast %36 : vector<1x32x32xf32> to vector<2x32x32xf32>
    %38 = arith.mulf %35, %37 : vector<2x32x32xf32>
    "tpu.trace_start"() <{level = 10 : i32, message = "bqd,bjd->bqj"}> : () -> ()
    %cst_20 = arith.constant dense<0.000000e+00> : vector<2x8x32xf32>
    %39 = tpu.matmul %28, %34, %cst_20 {dimension_numbers = #tpu.dot_dimension_numbers<[2], [2], [1], [1], [0, 0, 0, 1, 1, 1], [0], [0]>} : vector<2x8x32xf32>, vector<2x32x32xf32>, vector<2x8x32xf32> -> vector<2x8x32xf32>
    "tpu.trace_stop"() : () -> ()
    %40 = vector.shape_cast %39 : vector<2x8x32xf32> to vector<16x32xf32>
    %cst_21 = arith.constant dense<0xFF800000> : vector<16xf32>
    %41 = vector.multi_reduction <maximumf>, %40, %cst_21 [1] : vector<16x32xf32> to vector<16xf32>
    %42 = vector.shape_cast %41 : vector<16xf32> to vector<16x1xf32>
    %43 = vector.broadcast %42 : vector<16x1xf32> to vector<16x32xf32>
    %44 = arith.subf %40, %43 : vector<16x32xf32>
    %45 = math.exp %44 : vector<16x32xf32>
    %cst_22 = arith.constant dense<0.000000e+00> : vector<16x32xf32>
    %46 = tpu.matmul %45, %12, %cst_22 {dimension_numbers = #tpu.dot_dimension_numbers<[1], [0], [0], [1], [0, 0, 1, 1], [], []>} : vector<16x32xf32>, vector<32x32xf32>, vector<16x32xf32> -> vector<16x32xf32>
    %47 = tpu.reciprocal %46 {approx = true} : vector<16x32xf32> -> vector<16x32xf32>
    %48 = arith.mulf %45, %47 : vector<16x32xf32>
    %49 = vector.shape_cast %48 : vector<16x32xf32> to vector<2x8x32xf32>
    "tpu.trace_start"() <{level = 10 : i32, message = "bqj,bje->bqe"}> : () -> ()
    %cst_23 = arith.constant dense<0.000000e+00> : vector<2x8x32xf32>
    %50 = tpu.matmul %49, %38, %cst_23 {dimension_numbers = #tpu.dot_dimension_numbers<[2], [1], [1], [2], [0, 0, 0, 1, 1, 2], [0], [0]>} : vector<2x8x32xf32>, vector<2x32x32xf32>, vector<2x8x32xf32> -> vector<2x8x32xf32>
    "tpu.trace_stop"() : () -> ()
    %51 = vector.shape_cast %50 : vector<2x8x32xf32> to vector<16x32xf32>
    %c392 = arith.constant 392 : index
    %c0_24 = arith.constant 0 : index
    %52 = vector.load %arg2[%c392, %c0_24] : memref<1440x128xf32, #tpu.memory_space<vmem>>, vector<32x32xf32>
    %cst_25 = arith.constant dense<0.000000e+00> : vector<16x32xf32>
    %53 = tpu.matmul %51, %52, %cst_25 {dimension_numbers = #tpu.dot_dimension_numbers<[1], [0], [0], [1], [0, 0, 1, 1], [], []>} : vector<16x32xf32>, vector<32x32xf32>, vector<16x32xf32> -> vector<16x32xf32>
    %c424 = arith.constant 424 : index
    %c0_26 = arith.constant 0 : index
    %54 = vector.load %arg2[%c424, %c0_26] : memref<1440x128xf32, #tpu.memory_space<vmem>>, vector<1x32xf32>
    %55 = vector.broadcast %54 : vector<1x32xf32> to vector<16x32xf32>
    %56 = arith.addf %53, %55 : vector<16x32xf32>
    %57 = arith.addf %10, %56 : vector<16x32xf32>
    %c432 = arith.constant 432 : index
    %c0_27 = arith.constant 0 : index
    %58 = vector.load %arg2[%c432, %c0_27] : memref<1440x128xf32, #tpu.memory_space<vmem>>, vector<1x32xf32>
    %c440 = arith.constant 440 : index
    %c0_28 = arith.constant 0 : index
    %59 = vector.load %arg2[%c440, %c0_28] : memref<1440x128xf32, #tpu.memory_space<vmem>>, vector<1x32xf32>
    %cst_29 = arith.constant dense<0.000000e+00> : vector<16xf32>
    %60 = vector.multi_reduction <add>, %57, %cst_29 [1] : vector<16x32xf32> to vector<16xf32>
    %61 = vector.shape_cast %60 : vector<16xf32> to vector<16x1xf32>
    %62 = arith.mulf %57, %57 : vector<16x32xf32>
    %cst_30 = arith.constant dense<0.000000e+00> : vector<16xf32>
    %63 = vector.multi_reduction <add>, %62, %cst_30 [1] : vector<16x32xf32> to vector<16xf32>
    %64 = vector.shape_cast %63 : vector<16xf32> to vector<16x1xf32>
    %cst_31 = arith.constant 3.125000e-02 : f32
    %65 = vector.broadcast %cst_31 : f32 to vector<16x1xf32>
    %66 = arith.mulf %61, %65 : vector<16x1xf32>
    %cst_32 = arith.constant 3.125000e-02 : f32
    %67 = vector.broadcast %cst_32 : f32 to vector<16x1xf32>
    %68 = arith.mulf %64, %67 : vector<16x1xf32>
    %69 = arith.mulf %66, %66 : vector<16x1xf32>
    %70 = arith.subf %68, %69 : vector<16x1xf32>
    %71 = vector.broadcast %66 : vector<16x1xf32> to vector<16x32xf32>
    %72 = arith.subf %57, %71 : vector<16x32xf32>
    %cst_33 = arith.constant 9.99999974E-6 : f32
    %73 = vector.broadcast %cst_33 : f32 to vector<16x1xf32>
    %74 = arith.addf %70, %73 : vector<16x1xf32>
    %75 = math.rsqrt %74 : vector<16x1xf32>
    %76 = vector.broadcast %75 : vector<16x1xf32> to vector<16x32xf32>
    %77 = arith.mulf %72, %76 : vector<16x32xf32>
    %78 = vector.broadcast %58 : vector<1x32xf32> to vector<16x32xf32>
    %79 = arith.mulf %77, %78 : vector<16x32xf32>
    %80 = vector.broadcast %59 : vector<1x32xf32> to vector<16x32xf32>
    %81 = arith.addf %79, %80 : vector<16x32xf32>
    %c448 = arith.constant 448 : index
    %c0_34 = arith.constant 0 : index
    %82 = vector.load %arg2[%c448, %c0_34] : memref<1440x128xf32, #tpu.memory_space<vmem>>, vector<32x64xf32>
    %cst_35 = arith.constant dense<0.000000e+00> : vector<16x64xf32>
    %83 = tpu.matmul %81, %82, %cst_35 {dimension_numbers = #tpu.dot_dimension_numbers<[1], [0], [0], [1], [0, 0, 1, 1], [], []>} : vector<16x32xf32>, vector<32x64xf32>, vector<16x64xf32> -> vector<16x64xf32>
    %c480 = arith.constant 480 : index
    %c0_36 = arith.constant 0 : index
    %84 = vector.load %arg2[%c480, %c0_36] : memref<1440x128xf32, #tpu.memory_space<vmem>>, vector<1x64xf32>
    %85 = vector.broadcast %84 : vector<1x64xf32> to vector<16x64xf32>
    %86 = arith.addf %83, %85 : vector<16x64xf32>
    %cst_37 = arith.constant 0.000000e+00 : f32
    %87 = vector.broadcast %cst_37 : f32 to vector<16x64xf32>
    %88 = arith.maximumf %86, %87 : vector<16x64xf32>
    %c488 = arith.constant 488 : index
    %c0_38 = arith.constant 0 : index
    %89 = vector.load %arg2[%c488, %c0_38] : memref<1440x128xf32, #tpu.memory_space<vmem>>, vector<64x32xf32>
    %cst_39 = arith.constant dense<0.000000e+00> : vector<16x32xf32>
    %90 = tpu.matmul %88, %89, %cst_39 {dimension_numbers = #tpu.dot_dimension_numbers<[1], [0], [0], [1], [0, 0, 1, 1], [], []>} : vector<16x64xf32>, vector<64x32xf32>, vector<16x32xf32> -> vector<16x32xf32>
    %c552 = arith.constant 552 : index
    %c0_40 = arith.constant 0 : index
    %91 = vector.load %arg2[%c552, %c0_40] : memref<1440x128xf32, #tpu.memory_space<vmem>>, vector<1x32xf32>
    %92 = vector.broadcast %91 : vector<1x32xf32> to vector<16x32xf32>
    %93 = arith.addf %90, %92 : vector<16x32xf32>
    %94 = arith.addf %81, %93 : vector<16x32xf32>
    %c560 = arith.constant 560 : index
    %c0_41 = arith.constant 0 : index
    %95 = vector.load %arg2[%c560, %c0_41] : memref<1440x128xf32, #tpu.memory_space<vmem>>, vector<1x32xf32>
    %c568 = arith.constant 568 : index
    %c0_42 = arith.constant 0 : index
    %96 = vector.load %arg2[%c568, %c0_42] : memref<1440x128xf32, #tpu.memory_space<vmem>>, vector<1x32xf32>
    %cst_43 = arith.constant dense<0.000000e+00> : vector<16xf32>
    %97 = vector.multi_reduction <add>, %94, %cst_43 [1] : vector<16x32xf32> to vector<16xf32>
    %98 = vector.shape_cast %97 : vector<16xf32> to vector<16x1xf32>
    %99 = arith.mulf %94, %94 : vector<16x32xf32>
    %cst_44 = arith.constant dense<0.000000e+00> : vector<16xf32>
    %100 = vector.multi_reduction <add>, %99, %cst_44 [1] : vector<16x32xf32> to vector<16xf32>
    %101 = vector.shape_cast %100 : vector<16xf32> to vector<16x1xf32>
    %cst_45 = arith.constant 3.125000e-02 : f32
    %102 = vector.broadcast %cst_45 : f32 to vector<16x1xf32>
    %103 = arith.mulf %98, %102 : vector<16x1xf32>
    %cst_46 = arith.constant 3.125000e-02 : f32
    %104 = vector.broadcast %cst_46 : f32 to vector<16x1xf32>
    %105 = arith.mulf %101, %104 : vector<16x1xf32>
    %106 = arith.mulf %103, %103 : vector<16x1xf32>
    %107 = arith.subf %105, %106 : vector<16x1xf32>
    %108 = vector.broadcast %103 : vector<16x1xf32> to vector<16x32xf32>
    %109 = arith.subf %94, %108 : vector<16x32xf32>
    %cst_47 = arith.constant 9.99999974E-6 : f32
    %110 = vector.broadcast %cst_47 : f32 to vector<16x1xf32>
    %111 = arith.addf %107, %110 : vector<16x1xf32>
    %112 = math.rsqrt %111 : vector<16x1xf32>
    %113 = vector.broadcast %112 : vector<16x1xf32> to vector<16x32xf32>
    %114 = arith.mulf %109, %113 : vector<16x32xf32>
    %115 = vector.broadcast %95 : vector<1x32xf32> to vector<16x32xf32>
    %116 = arith.mulf %114, %115 : vector<16x32xf32>
    %117 = vector.broadcast %96 : vector<1x32xf32> to vector<16x32xf32>
    %118 = arith.addf %116, %117 : vector<16x32xf32>
    %c576 = arith.constant 576 : index
    %c0_48 = arith.constant 0 : index
    %119 = vector.load %arg2[%c576, %c0_48] : memref<1440x128xf32, #tpu.memory_space<vmem>>, vector<32x32xf32>
    %cst_49 = arith.constant dense<0.000000e+00> : vector<16x32xf32>
    %120 = tpu.matmul %118, %119, %cst_49 {dimension_numbers = #tpu.dot_dimension_numbers<[1], [0], [0], [1], [0, 0, 1, 1], [], []>} : vector<16x32xf32>, vector<32x32xf32>, vector<16x32xf32> -> vector<16x32xf32>
    %c608 = arith.constant 608 : index
    %c0_50 = arith.constant 0 : index
    %121 = vector.load %arg2[%c608, %c0_50] : memref<1440x128xf32, #tpu.memory_space<vmem>>, vector<1x32xf32>
    %122 = vector.broadcast %121 : vector<1x32xf32> to vector<16x32xf32>
    %123 = arith.addf %120, %122 : vector<16x32xf32>
    %c616 = arith.constant 616 : index
    %c0_51 = arith.constant 0 : index
    %124 = vector.load %arg2[%c616, %c0_51] : memref<1440x128xf32, #tpu.memory_space<vmem>>, vector<32x32xf32>
    %cst_52 = arith.constant dense<0.000000e+00> : vector<16x32xf32>
    %125 = tpu.matmul %118, %124, %cst_52 {dimension_numbers = #tpu.dot_dimension_numbers<[1], [0], [0], [1], [0, 0, 1, 1], [], []>} : vector<16x32xf32>, vector<32x32xf32>, vector<16x32xf32> -> vector<16x32xf32>
    %c648 = arith.constant 648 : index
    %c0_53 = arith.constant 0 : index
    %126 = vector.load %arg2[%c648, %c0_53] : memref<1440x128xf32, #tpu.memory_space<vmem>>, vector<1x32xf32>
    %127 = vector.broadcast %126 : vector<1x32xf32> to vector<16x32xf32>
    %128 = arith.addf %125, %127 : vector<16x32xf32>
    %c656 = arith.constant 656 : index
    %c0_54 = arith.constant 0 : index
    %129 = vector.load %arg2[%c656, %c0_54] : memref<1440x128xf32, #tpu.memory_space<vmem>>, vector<32x32xf32>
    %cst_55 = arith.constant dense<0.000000e+00> : vector<16x32xf32>
    %130 = tpu.matmul %118, %129, %cst_55 {dimension_numbers = #tpu.dot_dimension_numbers<[1], [0], [0], [1], [0, 0, 1, 1], [], []>} : vector<16x32xf32>, vector<32x32xf32>, vector<16x32xf32> -> vector<16x32xf32>
    %c688 = arith.constant 688 : index
    %c0_56 = arith.constant 0 : index
    %131 = vector.load %arg2[%c688, %c0_56] : memref<1440x128xf32, #tpu.memory_space<vmem>>, vector<1x32xf32>
    %132 = vector.broadcast %131 : vector<1x32xf32> to vector<16x32xf32>
    %133 = arith.addf %130, %132 : vector<16x32xf32>
    %134 = vector.shape_cast %123 : vector<16x32xf32> to vector<2x8x32xf32>
    %135 = vector.shape_cast %128 : vector<16x32xf32> to vector<2x8x32xf32>
    %136 = vector.shape_cast %133 : vector<16x32xf32> to vector<2x8x32xf32>
    %137 = tpu.concatenate %135, %135, %135, %135 in 1 : vector<2x8x32xf32>, vector<2x8x32xf32>, vector<2x8x32xf32>, vector<2x8x32xf32> -> vector<2x32x32xf32>
    %138 = vector.shape_cast %11 : vector<32x32xf32> to vector<1x32x32xf32>
    %139 = vector.broadcast %138 : vector<1x32x32xf32> to vector<2x32x32xf32>
    %140 = arith.mulf %137, %139 : vector<2x32x32xf32>
    %141 = tpu.concatenate %136, %136, %136, %136 in 1 : vector<2x8x32xf32>, vector<2x8x32xf32>, vector<2x8x32xf32>, vector<2x8x32xf32> -> vector<2x32x32xf32>
    %142 = vector.shape_cast %11 : vector<32x32xf32> to vector<1x32x32xf32>
    %143 = vector.broadcast %142 : vector<1x32x32xf32> to vector<2x32x32xf32>
    %144 = arith.mulf %141, %143 : vector<2x32x32xf32>
    "tpu.trace_start"() <{level = 10 : i32, message = "bqd,bjd->bqj"}> : () -> ()
    %cst_57 = arith.constant dense<0.000000e+00> : vector<2x8x32xf32>
    %145 = tpu.matmul %134, %140, %cst_57 {dimension_numbers = #tpu.dot_dimension_numbers<[2], [2], [1], [1], [0, 0, 0, 1, 1, 1], [0], [0]>} : vector<2x8x32xf32>, vector<2x32x32xf32>, vector<2x8x32xf32> -> vector<2x8x32xf32>
    "tpu.trace_stop"() : () -> ()
    %146 = vector.shape_cast %145 : vector<2x8x32xf32> to vector<16x32xf32>
    %cst_58 = arith.constant dense<0xFF800000> : vector<16xf32>
    %147 = vector.multi_reduction <maximumf>, %146, %cst_58 [1] : vector<16x32xf32> to vector<16xf32>
    %148 = vector.shape_cast %147 : vector<16xf32> to vector<16x1xf32>
    %149 = vector.broadcast %148 : vector<16x1xf32> to vector<16x32xf32>
    %150 = arith.subf %146, %149 : vector<16x32xf32>
    %151 = math.exp %150 : vector<16x32xf32>
    %cst_59 = arith.constant dense<0.000000e+00> : vector<16x32xf32>
    %152 = tpu.matmul %151, %12, %cst_59 {dimension_numbers = #tpu.dot_dimension_numbers<[1], [0], [0], [1], [0, 0, 1, 1], [], []>} : vector<16x32xf32>, vector<32x32xf32>, vector<16x32xf32> -> vector<16x32xf32>
    %153 = tpu.reciprocal %152 {approx = true} : vector<16x32xf32> -> vector<16x32xf32>
    %154 = arith.mulf %151, %153 : vector<16x32xf32>
    %155 = vector.shape_cast %154 : vector<16x32xf32> to vector<2x8x32xf32>
    "tpu.trace_start"() <{level = 10 : i32, message = "bqj,bje->bqe"}> : () -> ()
    %cst_60 = arith.constant dense<0.000000e+00> : vector<2x8x32xf32>
    %156 = tpu.matmul %155, %144, %cst_60 {dimension_numbers = #tpu.dot_dimension_numbers<[2], [1], [1], [2], [0, 0, 0, 1, 1, 2], [0], [0]>} : vector<2x8x32xf32>, vector<2x32x32xf32>, vector<2x8x32xf32> -> vector<2x8x32xf32>
    "tpu.trace_stop"() : () -> ()
    %157 = vector.shape_cast %156 : vector<2x8x32xf32> to vector<16x32xf32>
    %c696 = arith.constant 696 : index
    %c0_61 = arith.constant 0 : index
    %158 = vector.load %arg2[%c696, %c0_61] : memref<1440x128xf32, #tpu.memory_space<vmem>>, vector<32x32xf32>
    %cst_62 = arith.constant dense<0.000000e+00> : vector<16x32xf32>
    %159 = tpu.matmul %157, %158, %cst_62 {dimension_numbers = #tpu.dot_dimension_numbers<[1], [0], [0], [1], [0, 0, 1, 1], [], []>} : vector<16x32xf32>, vector<32x32xf32>, vector<16x32xf32> -> vector<16x32xf32>
    %c728 = arith.constant 728 : index
    %c0_63 = arith.constant 0 : index
    %160 = vector.load %arg2[%c728, %c0_63] : memref<1440x128xf32, #tpu.memory_space<vmem>>, vector<1x32xf32>
    %161 = vector.broadcast %160 : vector<1x32xf32> to vector<16x32xf32>
    %162 = arith.addf %159, %161 : vector<16x32xf32>
    %163 = arith.addf %118, %162 : vector<16x32xf32>
    %c736 = arith.constant 736 : index
    %c0_64 = arith.constant 0 : index
    %164 = vector.load %arg2[%c736, %c0_64] : memref<1440x128xf32, #tpu.memory_space<vmem>>, vector<1x32xf32>
    %c744 = arith.constant 744 : index
    %c0_65 = arith.constant 0 : index
    %165 = vector.load %arg2[%c744, %c0_65] : memref<1440x128xf32, #tpu.memory_space<vmem>>, vector<1x32xf32>
    %cst_66 = arith.constant dense<0.000000e+00> : vector<16xf32>
    %166 = vector.multi_reduction <add>, %163, %cst_66 [1] : vector<16x32xf32> to vector<16xf32>
    %167 = vector.shape_cast %166 : vector<16xf32> to vector<16x1xf32>
    %168 = arith.mulf %163, %163 : vector<16x32xf32>
    %cst_67 = arith.constant dense<0.000000e+00> : vector<16xf32>
    %169 = vector.multi_reduction <add>, %168, %cst_67 [1] : vector<16x32xf32> to vector<16xf32>
    %170 = vector.shape_cast %169 : vector<16xf32> to vector<16x1xf32>
    %cst_68 = arith.constant 3.125000e-02 : f32
    %171 = vector.broadcast %cst_68 : f32 to vector<16x1xf32>
    %172 = arith.mulf %167, %171 : vector<16x1xf32>
    %cst_69 = arith.constant 3.125000e-02 : f32
    %173 = vector.broadcast %cst_69 : f32 to vector<16x1xf32>
    %174 = arith.mulf %170, %173 : vector<16x1xf32>
    %175 = arith.mulf %172, %172 : vector<16x1xf32>
    %176 = arith.subf %174, %175 : vector<16x1xf32>
    %177 = vector.broadcast %172 : vector<16x1xf32> to vector<16x32xf32>
    %178 = arith.subf %163, %177 : vector<16x32xf32>
    %cst_70 = arith.constant 9.99999974E-6 : f32
    %179 = vector.broadcast %cst_70 : f32 to vector<16x1xf32>
    %180 = arith.addf %176, %179 : vector<16x1xf32>
    %181 = math.rsqrt %180 : vector<16x1xf32>
    %182 = vector.broadcast %181 : vector<16x1xf32> to vector<16x32xf32>
    %183 = arith.mulf %178, %182 : vector<16x32xf32>
    %184 = vector.broadcast %164 : vector<1x32xf32> to vector<16x32xf32>
    %185 = arith.mulf %183, %184 : vector<16x32xf32>
    %186 = vector.broadcast %165 : vector<1x32xf32> to vector<16x32xf32>
    %187 = arith.addf %185, %186 : vector<16x32xf32>
    %c752 = arith.constant 752 : index
    %c0_71 = arith.constant 0 : index
    %188 = vector.load %arg2[%c752, %c0_71] : memref<1440x128xf32, #tpu.memory_space<vmem>>, vector<32x64xf32>
    %cst_72 = arith.constant dense<0.000000e+00> : vector<16x64xf32>
    %189 = tpu.matmul %187, %188, %cst_72 {dimension_numbers = #tpu.dot_dimension_numbers<[1], [0], [0], [1], [0, 0, 1, 1], [], []>} : vector<16x32xf32>, vector<32x64xf32>, vector<16x64xf32> -> vector<16x64xf32>
    %c784 = arith.constant 784 : index
    %c0_73 = arith.constant 0 : index
    %190 = vector.load %arg2[%c784, %c0_73] : memref<1440x128xf32, #tpu.memory_space<vmem>>, vector<1x64xf32>
    %191 = vector.broadcast %190 : vector<1x64xf32> to vector<16x64xf32>
    %192 = arith.addf %189, %191 : vector<16x64xf32>
    %cst_74 = arith.constant 0.000000e+00 : f32
    %193 = vector.broadcast %cst_74 : f32 to vector<16x64xf32>
    %194 = arith.maximumf %192, %193 : vector<16x64xf32>
    %c792 = arith.constant 792 : index
    %c0_75 = arith.constant 0 : index
    %195 = vector.load %arg2[%c792, %c0_75] : memref<1440x128xf32, #tpu.memory_space<vmem>>, vector<64x32xf32>
    %cst_76 = arith.constant dense<0.000000e+00> : vector<16x32xf32>
    %196 = tpu.matmul %194, %195, %cst_76 {dimension_numbers = #tpu.dot_dimension_numbers<[1], [0], [0], [1], [0, 0, 1, 1], [], []>} : vector<16x64xf32>, vector<64x32xf32>, vector<16x32xf32> -> vector<16x32xf32>
    %c856 = arith.constant 856 : index
    %c0_77 = arith.constant 0 : index
    %197 = vector.load %arg2[%c856, %c0_77] : memref<1440x128xf32, #tpu.memory_space<vmem>>, vector<1x32xf32>
    %198 = vector.broadcast %197 : vector<1x32xf32> to vector<16x32xf32>
    %199 = arith.addf %196, %198 : vector<16x32xf32>
    %200 = arith.addf %187, %199 : vector<16x32xf32>
    %c864 = arith.constant 864 : index
    %c0_78 = arith.constant 0 : index
    %201 = vector.load %arg2[%c864, %c0_78] : memref<1440x128xf32, #tpu.memory_space<vmem>>, vector<1x32xf32>
    %c872 = arith.constant 872 : index
    %c0_79 = arith.constant 0 : index
    %202 = vector.load %arg2[%c872, %c0_79] : memref<1440x128xf32, #tpu.memory_space<vmem>>, vector<1x32xf32>
    %cst_80 = arith.constant dense<0.000000e+00> : vector<16xf32>
    %203 = vector.multi_reduction <add>, %200, %cst_80 [1] : vector<16x32xf32> to vector<16xf32>
    %204 = vector.shape_cast %203 : vector<16xf32> to vector<16x1xf32>
    %205 = arith.mulf %200, %200 : vector<16x32xf32>
    %cst_81 = arith.constant dense<0.000000e+00> : vector<16xf32>
    %206 = vector.multi_reduction <add>, %205, %cst_81 [1] : vector<16x32xf32> to vector<16xf32>
    %207 = vector.shape_cast %206 : vector<16xf32> to vector<16x1xf32>
    %cst_82 = arith.constant 3.125000e-02 : f32
    %208 = vector.broadcast %cst_82 : f32 to vector<16x1xf32>
    %209 = arith.mulf %204, %208 : vector<16x1xf32>
    %cst_83 = arith.constant 3.125000e-02 : f32
    %210 = vector.broadcast %cst_83 : f32 to vector<16x1xf32>
    %211 = arith.mulf %207, %210 : vector<16x1xf32>
    %212 = arith.mulf %209, %209 : vector<16x1xf32>
    %213 = arith.subf %211, %212 : vector<16x1xf32>
    %214 = vector.broadcast %209 : vector<16x1xf32> to vector<16x32xf32>
    %215 = arith.subf %200, %214 : vector<16x32xf32>
    %cst_84 = arith.constant 9.99999974E-6 : f32
    %216 = vector.broadcast %cst_84 : f32 to vector<16x1xf32>
    %217 = arith.addf %213, %216 : vector<16x1xf32>
    %218 = math.rsqrt %217 : vector<16x1xf32>
    %219 = vector.broadcast %218 : vector<16x1xf32> to vector<16x32xf32>
    %220 = arith.mulf %215, %219 : vector<16x32xf32>
    %221 = vector.broadcast %201 : vector<1x32xf32> to vector<16x32xf32>
    %222 = arith.mulf %220, %221 : vector<16x32xf32>
    %223 = vector.broadcast %202 : vector<1x32xf32> to vector<16x32xf32>
    %224 = arith.addf %222, %223 : vector<16x32xf32>
    %225 = tpu.concatenate %224, %224, %224, %224, %224, %224, %224, %224 in 1 : vector<16x32xf32>, vector<16x32xf32>, vector<16x32xf32>, vector<16x32xf32>, vector<16x32xf32>, vector<16x32xf32>, vector<16x32xf32>, vector<16x32xf32> -> vector<16x256xf32>
    %c24 = arith.constant 24 : index
    %c0_85 = arith.constant 0 : index
    %226 = vector.load %arg1[%c24, %c0_85] : memref<504x256xf32, #tpu.memory_space<vmem>>, vector<16x256xf32>
    %227 = arith.mulf %225, %226 : vector<16x256xf32>
    %c40 = arith.constant 40 : index
    %c0_86 = arith.constant 0 : index
    %228 = vector.load %arg1[%c40, %c0_86] : memref<504x256xf32, #tpu.memory_space<vmem>>, vector<256x256xf32>
    %cst_87 = arith.constant dense<0.000000e+00> : vector<16x256xf32>
    %229 = tpu.matmul %227, %228, %cst_87 {dimension_numbers = #tpu.dot_dimension_numbers<[1], [0], [0], [1], [0, 0, 1, 1], [], []>} : vector<16x256xf32>, vector<256x256xf32>, vector<16x256xf32> -> vector<16x256xf32>
    %c944 = arith.constant 944 : index
    %c0_88 = arith.constant 0 : index
    %230 = vector.load %arg2[%c944, %c0_88] : memref<1440x128xf32, #tpu.memory_space<vmem>>, vector<2x16xf32>
    %cst_89 = arith.constant dense<0.000000e+00> : vector<2x256xf32>
    %231 = tpu.matmul %230, %229, %cst_89 {dimension_numbers = #tpu.dot_dimension_numbers<[1], [0], [0], [1], [0, 0, 1, 1], [], []>} : vector<2x16xf32>, vector<16x256xf32>, vector<2x256xf32> -> vector<2x256xf32>
    %c296 = arith.constant 296 : index
    %c0_90 = arith.constant 0 : index
    %232 = vector.load %arg1[%c296, %c0_90] : memref<504x256xf32, #tpu.memory_space<vmem>>, vector<1x256xf32>
    %233 = vector.broadcast %232 : vector<1x256xf32> to vector<2x256xf32>
    %234 = arith.addf %231, %233 : vector<2x256xf32>
    %cst_91 = arith.constant 0.000000e+00 : f32
    %235 = vector.broadcast %cst_91 : f32 to vector<2x256xf32>
    %236 = arith.maximumf %234, %235 : vector<2x256xf32>
    %c1152 = arith.constant 1152 : index
    %c0_92 = arith.constant 0 : index
    %237 = vector.load %arg2[%c1152, %c0_92] : memref<1440x128xf32, #tpu.memory_space<vmem>>, vector<256x3xf32>
    %cst_93 = arith.constant dense<0.000000e+00> : vector<2x3xf32>
    %238 = tpu.matmul %236, %237, %cst_93 {dimension_numbers = #tpu.dot_dimension_numbers<[1], [0], [0], [1], [0, 0, 1, 1], [], []>} : vector<2x256xf32>, vector<256x3xf32>, vector<2x3xf32> -> vector<2x3xf32>
    %c1408 = arith.constant 1408 : index
    %c0_94 = arith.constant 0 : index
    %239 = vector.load %arg2[%c1408, %c0_94] : memref<1440x128xf32, #tpu.memory_space<vmem>>, vector<1x3xf32>
    %240 = vector.broadcast %239 : vector<1x3xf32> to vector<2x3xf32>
    %241 = arith.addf %238, %240 : vector<2x3xf32>
    %cst_95 = arith.constant dense<0xFF800000> : vector<2xf32>
    %242 = vector.multi_reduction <maximumf>, %241, %cst_95 [1] : vector<2x3xf32> to vector<2xf32>
    %243 = vector.shape_cast %242 : vector<2xf32> to vector<2x1xf32>
    %244 = vector.broadcast %243 : vector<2x1xf32> to vector<2x3xf32>
    %245 = arith.subf %241, %244 : vector<2x3xf32>
    %246 = math.exp %245 : vector<2x3xf32>
    %cst_96 = arith.constant dense<0.000000e+00> : vector<2xf32>
    %247 = vector.multi_reduction <add>, %246, %cst_96 [1] : vector<2x3xf32> to vector<2xf32>
    %248 = vector.shape_cast %247 : vector<2xf32> to vector<2x1xf32>
    %249 = tpu.reciprocal %248 {approx = true} : vector<2x1xf32> -> vector<2x1xf32>
    %250 = vector.broadcast %249 : vector<2x1xf32> to vector<2x3xf32>
    %251 = arith.mulf %246, %250 : vector<2x3xf32>
    %252 = vector.extract_strided_slice %236 {offsets = [0, 0], sizes = [2, 192], strides = [1, 1]} : vector<2x256xf32> to vector<2x192xf32>
    %c304_97 = arith.constant 304 : index
    %c0_98 = arith.constant 0 : index
    %253 = vector.load %arg1[%c304_97, %c0_98] : memref<504x256xf32, #tpu.memory_space<vmem>>, vector<192x192xf32>
    %cst_99 = arith.constant dense<0.000000e+00> : vector<2x192xf32>
    %254 = tpu.matmul %252, %253, %cst_99 {dimension_numbers = #tpu.dot_dimension_numbers<[1], [0], [0], [1], [0, 0, 1, 1], [], []>} : vector<2x192xf32>, vector<192x192xf32>, vector<2x192xf32> -> vector<2x192xf32>
    %c496 = arith.constant 496 : index
    %c0_100 = arith.constant 0 : index
    %255 = vector.load %arg1[%c496, %c0_100] : memref<504x256xf32, #tpu.memory_space<vmem>>, vector<1x192xf32>
    %256 = vector.broadcast %255 : vector<1x192xf32> to vector<2x192xf32>
    %257 = arith.addf %254, %256 : vector<2x192xf32>
    %cst_101 = arith.constant 0.000000e+00 : f32
    %258 = vector.broadcast %cst_101 : f32 to vector<2x192xf32>
    %259 = arith.maximumf %257, %258 : vector<2x192xf32>
    %c952 = arith.constant 952 : index
    %c0_102 = arith.constant 0 : index
    %260 = vector.load %arg2[%c952, %c0_102] : memref<1440x128xf32, #tpu.memory_space<vmem>>, vector<192x12xf32>
    %cst_103 = arith.constant dense<0.000000e+00> : vector<2x12xf32>
    %261 = tpu.matmul %259, %260, %cst_103 {dimension_numbers = #tpu.dot_dimension_numbers<[1], [0], [0], [1], [0, 0, 1, 1], [], []>} : vector<2x192xf32>, vector<192x12xf32>, vector<2x12xf32> -> vector<2x12xf32>
    %c1144 = arith.constant 1144 : index
    %c0_104 = arith.constant 0 : index
    %262 = vector.load %arg2[%c1144, %c0_104] : memref<1440x128xf32, #tpu.memory_space<vmem>>, vector<1x12xf32>
    %263 = vector.broadcast %262 : vector<1x12xf32> to vector<2x12xf32>
    %264 = arith.addf %261, %263 : vector<2x12xf32>
    %c1416 = arith.constant 1416 : index
    %c0_105 = arith.constant 0 : index
    %265 = vector.load %arg2[%c1416, %c0_105] : memref<1440x128xf32, #tpu.memory_space<vmem>>, vector<3x12xf32>
    %cst_106 = arith.constant dense<0.000000e+00> : vector<2x12xf32>
    %266 = tpu.matmul %251, %265, %cst_106 {dimension_numbers = #tpu.dot_dimension_numbers<[1], [0], [0], [1], [0, 0, 1, 1], [], []>} : vector<2x3xf32>, vector<3x12xf32>, vector<2x12xf32> -> vector<2x12xf32>
    %267 = arith.mulf %264, %266 : vector<2x12xf32>
    %c1424 = arith.constant 1424 : index
    %c0_107 = arith.constant 0 : index
    %268 = vector.load %arg2[%c1424, %c0_107] : memref<1440x128xf32, #tpu.memory_space<vmem>>, vector<12x4xf32>
    %cst_108 = arith.constant dense<0.000000e+00> : vector<2x4xf32>
    %269 = tpu.matmul %267, %268, %cst_108 {dimension_numbers = #tpu.dot_dimension_numbers<[1], [0], [0], [1], [0, 0, 1, 1], [], []>} : vector<2x12xf32>, vector<12x4xf32>, vector<2x4xf32> -> vector<2x4xf32>
    %c0_109 = arith.constant 0 : index
    %c0_110 = arith.constant 0 : index
    %270 = vector.load %arg3[%c0_109, %c0_110] : memref<2x4xf32, #tpu.memory_space<vmem>>, vector<2x4xf32>
    tpu.vector_store %arg3[%c0_109, %c0_110], %269 {strides = array<i32>} : memref<2x4xf32, #tpu.memory_space<vmem>>, vector<2x4xf32>,
    return
  }
}

</mosaic_0001>

<bundles_post_ra>
// kernel: transformer_block_forward.1
= control target key start
LH: loop header
LB: loop body
LE: loop exit
PB: predicated region body
PF: predicated region fallthrough
CT: control target
= control target key end

     0   :  { %8 = vsyncpa [#allocation3], 0  ;;  %s4592_s0 = inlined_call_operand.vmem [shape: f32[16,8], index: 0, kind: input, shape index: {}]   ;;  %s4593_s1 = inlined_call_operand.hbm [shape: f32[504,256], index: 1, kind: input, shape index: {}]   ;;  %s4594_s2 = inlined_call_operand.hbm [shape: f32[1440,128], index: 2, kind: input, shape index: {}]   ;;  %s4595_s3 = inlined_call_operand.hbm [shape: f32[2,4], index: 3, kind: output, shape index: {}]  }
   0x1   :  { %9 = vsyncpa [#allocation6], 0 }
   0x2   :  { %10 = vsyncpa [#allocation4], 0  ;;  %s4260_s12 = smov [#allocation2]   ;;  %s4188_s16 = scalar_lea.hbm %s4593_s1, 16128 }
   0x3   :  { %s18_s13 = sshll.u32 %s4260_s12, 4  ;;  %p4189_p0 = scmp.ne.s32.totalorder %s4593_s1, %s4188_s16  ;;  %s19_s13 = int_to_ptr.vmem [resolvable:$true] %s18_s13 }
   0x4   :  { %p4192_p1 = scmp.lt.u32.totalorder %s4188_s16, %s4593_s1 }
   0x6   :  { %p4194_p2 = pnand %p4192_p1, %p4189_p0 }
   0x8   :  { %4197 = shalt.err (!%p4194_p2)
}
   0x9   :  { %s4198_s21 = scalar_lea.vmem %s19_s13, 16128  ;;  %p4203_p4 = scmp.lt.s32.totalorder %s19_s13, %s19_s13 }
   0xa   :  { %p4199_p3 = scmp.ne.s32.totalorder %s19_s13, %s4198_s21  ;;  %p4204_p5 = scmp.lt.s32.totalorder %s4198_s21, %s4198_s21 }
   0xc   :  { %p4205_p6 = por %p4204_p5, %p4203_p4 }
   0xe   :  { %p4206_p7 = pnand %p4205_p6, %p4199_p3 }
  0x10   :  { %4209 = shalt.err (!%p4206_p7)
}
  0x11   :  { %s4261_s22 = smov 256   ;;  %s4262_s23 = smov 16  }
  0x12   :  { %24 = dma.hbm_to_vmem [thread:$0]  %s4593_s1, 16128, %s19_s13, [#allocation3], %s4261_s22, %s4261_s22, %s4262_s23  }
  0x13   :  { %s4263_s26 = smov [#allocation5]   ;;  %s4210_s30 = scalar_lea.hbm %s4594_s2, 23040 }
  0x14   :  { %s30_s27 = sshll.u32 %s4263_s26, 4  ;;  %p4211_p8 = scmp.ne.s32.totalorder %s4594_s2, %s4210_s30  ;;  %s31_s27 = int_to_ptr.vmem [resolvable:$true] %s30_s27 }
  0x15   :  { %p4214_p9 = scmp.lt.u32.totalorder %s4210_s30, %s4594_s2 }
  0x17   :  { %p4216_p10 = pnand %p4214_p9, %p4211_p8 }
  0x19   :  { %4219 = shalt.err (!%p4216_p10)
}
  0x1a   :  { %s4220_s8 = scalar_lea.vmem %s31_s27, 23040  ;;  %p4225_p12 = scmp.lt.s32.totalorder %s31_s27, %s31_s27 }
  0x1b   :  { %p4221_p11 = scmp.ne.s32.totalorder %s31_s27, %s4220_s8  ;;  %p4226_p13 = scmp.lt.s32.totalorder %s4220_s8, %s4220_s8 }
  0x1d   :  { %p4227_p0 = por %p4226_p13, %p4225_p12 }
  0x1f   :  { %p4228_p1 = pnand %p4227_p0, %p4221_p11 }
  0x21   :  { %4231 = shalt.err (!%p4228_p1)
}
  0x22   :  { %s4264_s1 = smov 128   ;;  %s4265_s9 = smov 8  }
  0x23   :  { %36 = dma.hbm_to_vmem [thread:$0]  %s4594_s2, 23040, %s31_s27, [#allocation6], %s4264_s1, %s4264_s1, %s4265_s9  }
  0x24   :  { %4254 = dma.done.wait [#allocation3], 16128  }
  0x25   :  { %4255 = vsyncadd [#allocation3], 4294951168 }
  0x26   :  { %4256 = dma.done.wait [#allocation6], 23040  }
  0x27   :  { %4257 = vsyncadd [#allocation6], 4294944256  ;;  %v4266_v0 = vmov 0.0   ;;  %v46_v1 = vld [vmem:[#allocation2 + $0x8] sm:$0xff]  ;;  %v45_v2 = vld [vmem:[#allocation2] sm:$0xff]  ;;  %vm51_vm0 = vcmask 64512  }
  0x28   :  { %122 = vmatprep.mubr.f32.mxu1 %v4266_v0  ;;  %v43_v3 = vld [vmem:[%s4592_s0] sm:$0xff]  ;;  %58 = vmatprep.subr.mxu1 %v46_v1  ;;  %v155_v4 = vld [vmem:[#allocation5 + $0x80] sm:$0xff]  ;;  %v156_v5 = vld [vmem:[#allocation5 + $0x88] sm:$0xff]  ;;  %vm265_vm1 = vcmask 261120   ;;  %vm4268_vm2 = vmmov 0   ;;  %vm1185_vm4 = vcmask 523264  }
  0x29   :  { %59 = vmatpush1.msra.mxu1 %v45_v2  ;;  %v3734_v6 = vpack.c.bf16 %v156_v5, %v155_v4  ;;  %v139_v7 = vld [vmem:[#allocation5] sm:$0xff]  ;;  %v140_v8 = vld [vmem:[#allocation5 + $0x8] sm:$0xff]  ;;  %v157_v9 = vld [vmem:[#allocation5 + $0x90] sm:$0xff]  ;;  %s4270_s15 = smov 64   ;;  %s4271_s16 = smov 96   ;;  %vm2392_vm5 = vcmask 785408  }
  0x2a   :  { %3171 = vmatmul.mubr.msk.f32.vlgmr.msra.gmra.mrb[0].mxu1 %vm51_vm0, %v43_v3  ;;  %v3736_v10 = vpack.c.bf16 %v140_v8, %v139_v7  ;;  %v158_v11 = vld [vmem:[#allocation5 + $0x98] sm:$0xff]  ;;  %v141_v12 = vld [vmem:[#allocation5 + $0x10] sm:$0xff]  ;;  %v159_v16 = vld [vmem:[#allocation5 + $0xa0] sm:$0xff]  ;;  %vm2558_vm6 = vcmask 130048   ;;  %vm2742_vm7 = vcmask 17408   ;;  %vm2998_vm8 = vcmask 1042432  }
  0x2b   :  { %v142_v13 = vld [vmem:[#allocation5 + $0x18] sm:$0xff]  ;;  %128 = vmatprep.mubr.f32.mxu1 %v4266_v0  ;;  %3735 = vmatprep.subr.bf16.mxu1 %v3734_v6  ;;  %v3738_v15 = vpack.c.bf16 %v158_v11, %v157_v9  ;;  %v160_v17 = vld [vmem:[#allocation5 + $0xa8] sm:$0xff]  ;;  %v143_v20 = vld [vmem:[#allocation5 + $0x20] sm:$0xff]  ;;  %vm2994_vm9 = vcmask 23552   ;;  %vm3079_vm10 = vcmask 1043456   ;;  %vm4272_vm11 = vmmov 1  }
  0x2c   :  { %v44_v14 = vld [vmem:[%s4592_s0 + $0x8] sm:$0xff]  ;;  %3737 = vmatpush3.bf16.msra.mxu1 %v3736_v10  ;;  %v3740_v18 = vpack.c.bf16 %v142_v13, %v141_v12  ;;  %v3742_v19 = vpack.c.bf16 %v160_v17, %v159_v16  ;;  %v144_v21 = vld [vmem:[#allocation5 + $0x28] sm:$0xff]  ;;  %v161_v22 = vld [vmem:[#allocation5 + $0xb0] sm:$0xff]  ;;  %s4269_s0 = smov 32   ;;  %vm3075_vm13 = vcmask 97280   ;;  %s4273_s17 = smov [#allocation7]  }
  0x2d   :  { %3739 = vmatprep.subr.bf16.mxu1 %v3738_v15  ;;  %v162_v23 = vld [vmem:[#allocation5 + $0xb8] sm:$0xff]  ;;  %v3744_v24 = vpack.c.bf16 %v144_v21, %v143_v20  ;;  %v145_v26 = vld [vmem:[#allocation5 + $0x30] sm:$0xff]  ;;  %v163_v28 = vld [vmem:[#allocation5 + $0xc0] sm:$0xff]  ;;  %s3161_s18 = sshll.u32 %s4273_s17, 4  ;;  %vm3153_vm14 = vcmask 25600   ;;  %s3162_s18 = int_to_ptr.vmem [resolvable:$true] %s3161_s18 }
  0x2e   :  { %3172 = vmatmul.mubr.msk.f32.gmra.mrb[2].mxu1 %vm51_vm0, %v44_v14  ;;  %v3746_v25 = vpack.c.bf16 %v162_v23, %v161_v22  ;;  %v146_v27 = vld [vmem:[#allocation5 + $0x38] sm:$0xff]  ;;  %v164_v29 = vld [vmem:[#allocation5 + $0xc8] sm:$0xff]  ;;  %v147_v32 = vld [vmem:[#allocation5 + $0x40] sm:$0xff]  ;;  %s4232_s19 = scalar_lea.vmem %s3162_s18, 32  ;;  %p4237_p3 = scmp.lt.s32.totalorder %s3162_s18, %s3162_s18 }
  0x2f   :  { %v3748_v30 = vpack.c.bf16 %v146_v27, %v145_v26  ;;  %v3750_v31 = vpack.c.bf16 %v164_v29, %v163_v28  ;;  %v148_v33 = vld [vmem:[#allocation5 + $0x48] sm:$0xff]  ;;  %v165_v34 = vld [vmem:[#allocation5 + $0xd0] sm:$0xff]  ;;  %v166_v35 = vld [vmem:[#allocation5 + $0xd8] sm:$0xff]  ;;  %p4233_p2 = scmp.ne.s32.totalorder %s3162_s18, %s4232_s19  ;;  %p4238_p4 = scmp.lt.s32.totalorder %s4232_s19, %s4232_s19 }
  0x30   :  { %3741 = vmatpush3.bf16.msra.mxu1 %v3740_v18  ;;  %v3752_v36 = vpack.c.bf16 %v148_v33, %v147_v32  ;;  %v3754_v37 = vpack.c.bf16 %v166_v35, %v165_v34  ;;  %v149_v38 = vld [vmem:[#allocation5 + $0x50] sm:$0xff]  ;;  %v150_v39 = vld [vmem:[#allocation5 + $0x58] sm:$0xff]  ;;  %v167_v40 = vld [vmem:[#allocation5 + $0xe0] sm:$0xff]  ;;  %v4267_v34 = vmov 0.0|0.0  }
  0x31   :  { %3743 = vmatprep.subr.bf16.mxu1 %v3742_v19  ;;  %v168_v41 = vld [vmem:[#allocation5 + $0xe8] sm:$0xff]  ;;  %v3756_v42 = vpack.c.bf16 %v150_v39, %v149_v38  ;;  %v151_v44 = vld [vmem:[#allocation5 + $0x60] sm:$0xff]  ;;  %v169_v47 = vld [vmem:[#allocation5 + $0xf0] sm:$0xff]  ;;  %p4239_p5 = por %p4238_p4, %p4237_p3 }
  0x32   :  { %v3758_v43 = vpack.c.bf16 %v168_v41, %v167_v40  ;;  %v152_v45 = vld [vmem:[#allocation5 + $0x68] sm:$0xff]  ;;  %v170_v48 = vld [vmem:[#allocation5 + $0xf8] sm:$0xff]  ;;  %v153_v50 = vld [vmem:[#allocation5 + $0x70] sm:$0xff] }
  0x33   :  { %v3760_v46 = vpack.c.bf16 %v152_v45, %v151_v44  ;;  %v3762_v49 = vpack.c.bf16 %v170_v48, %v169_v47  ;;  %v154_v51 = vld [vmem:[#allocation5 + $0x78] sm:$0xff]  ;;  %v47_v53 = vld [vmem:[#allocation2 + $0x10] sm:$0xff]  ;;  %v48_v54 = vld [vmem:[#allocation2 + $0x18] sm:$0xff]  ;;  %p4240_p6 = pnand %p4239_p5, %p4233_p2 }
  0x34   :  { %3745 = vmatpush3.bf16.msra.mxu1 %v3744_v24  ;;  %v3764_v52 = vpack.c.bf16 %v154_v51, %v153_v50  ;;  %v49_v59 = vld [vmem:[#allocation2 + $0x20] sm:$0xff]  ;;  %v50_v60 = vld [vmem:[#allocation2 + $0x28] sm:$0xff]  ;;  %v258_v9 = vld [vmem:[#allocation5 + $0x120] sm:$0xff] }
  0x35   :  { %3747 = vmatprep.subr.bf16.mxu1 %v3746_v25  ;;  %v256_v6 = vld [vmem:[#allocation5 + $0x110] sm:$0xff]  ;;  %v257_v7 = vld [vmem:[#allocation5 + $0x118] sm:$0xff]  ;;  %v259_v10 = vld [vmem:[#allocation5 + $0x128] sm:$0xff] }
  0x36   :  { %v3766_v8 = vpack.c.bf16 %v257_v7, %v256_v6  ;;  %v3770_v11 = vpack.c.bf16 %v259_v10, %v258_v9  ;;  %v347_v12 = vld [vmem:[#allocation5 + $0x138] sm:$0xff]  ;;  %v348_v13 = vld [vmem:[#allocation5 + $0x140] sm:$0xff]  ;;  %v172_v21 = vld [vmem:[#allocation5 + $0x108] sm:$0xff] }
  0x37   :  { %v3774_v14 = vpack.c.bf16 %v348_v13, %v347_v12  ;;  %v171_v16 = vld [vmem:[#allocation5 + $0x100] sm:$0xff]  ;;  %v349_v23 = vld [vmem:[#allocation5 + $0x148] sm:$0xff]  ;;  %v350_v24 = vld [vmem:[#allocation5 + $0x150] sm:$0xff] }
  0x38   :  { %3749 = vmatpush3.bf16.msra.mxu1 %v3748_v30  ;;  %3767 = vmatprep.subr.bf16.mxu0 %v3766_v8  ;;  %v3778_v27 = vpack.c.bf16 %v350_v24, %v349_v23  ;;  %v431_v28 = vld [vmem:[#allocation5 + $0x160] sm:$0xff]  ;;  %v432_v29 = vld [vmem:[#allocation5 + $0x168] sm:$0xff]  ;;  %v434_v32 = vld [vmem:[#allocation5 + $0x178] sm:$0xff] }
  0x39   :  { %3751 = vmatprep.subr.bf16.mxu1 %v3750_v31  ;;  %3769 = vmatpush3.bf16.msra.mxu0 %v3766_v8  ;;  %v3782_v30 = vpack.c.bf16 %v432_v29, %v431_v28  ;;  %v433_v31 = vld [vmem:[#allocation5 + $0x170] sm:$0xff]  ;;  %v4352_v39 = vld [vmem:[#allocation5 + $0x378] sm:$0xff]  ;;  %vm4360_vm3 = vmpackc.low %vm265_vm1, %vm265_vm1 }
  0x3a   :  { %3771 = vmatprep.subr.bf16.mxu0 %v3770_v11  ;;  %v3786_v33 = vpack.c.bf16 %v434_v32, %v433_v31  ;;  %v4350_v38 = vld [vmem:[#allocation5 + $0x370] sm:$0xff]  ;;  %v4364_v50 = vld [vmem:[#allocation5 + $0x380] sm:$0xff]  ;;  %v4366_v51 = vld [vmem:[#allocation5 + $0x388] sm:$0xff] }
  0x3b   :  { %vm4136_vm12 = vmpackc.low %vm3079_vm10, %vm4272_vm11 }
  0x3c   :  { %3753 = vmatpush3.bf16.msra.mxu1 %v3752_v36 }
  0x3d   :  { %3755 = vmatprep.subr.bf16.mxu1 %v3754_v37  ;;  %3773 = vmatpush3.bf16.msra.mxu0 %v3770_v11  ;;  %v3176_v37 = vld [vmem:[#allocation5 + $0x158] ss:$0 sm:$0xff] }
  0x3e   :  { %3775 = vmatprep.subr.bf16.mxu0 %v3774_v14 }
  0x40   :  { %3757 = vmatpush3.bf16.msra.mxu1 %v3756_v42 }
  0x41   :  { %3759 = vmatprep.subr.bf16.mxu1 %v3758_v43 }
  0x44   :  { %3761 = vmatpush3.bf16.msra.mxu1 %v3760_v46 }
  0x45   :  { %3763 = vmatprep.subr.bf16.mxu1 %v3762_v49 }
  0x48   :  { %3765 = vmatpush3.bf16.msra.mxu1 %v3764_v52 }
  0x49   :  { %3798 = vmatprep.subr.bf16.mxu1 %v4267_v34 }
  0xfd   :  { %v124_v55 = vpop.f32.mrb[0].mxu1 }
  0xfe   :  { %v125_v56 = vadd.f32 %v124_v55, %v47_v53  ;;  %v126_v57 = vpop.f32.mrb[1].mxu1  ;;  %v3179_v53 = vld [vmem:[#allocation5 + $0x180] ss:$0 sm:$0xff] }
  0xff   :  { %v127_v58 = vadd.f32 %v126_v57, %v48_v54 }
 0x100   :  { %v135_v63 = vmax.f32 %v125_v56, 0.0 }
 0x101   :  { %v136_v61 = vmax.f32 %v127_v58, 0.0  ;;  %v130_v62 = vpop.f32.mrb[2].mxu1 }
 0x102   :  { %v131_v1 = vadd.f32 %v130_v62, %v49_v59  ;;  %v132_v2 = vpop.f32.mrb[3].mxu1 }
 0x103   :  { %v133_v3 = vadd.f32 %v132_v2, %v50_v60  ;;  %237 = vmatprep.mubr.f32.mxu1 %v136_v61 }
 0x104   :  { %238 = vmatmul.mubr.f32.vlgmr.msra.gmra.mrb[4].mxu1 %v135_v63  ;;  %v137_v5 = vmax.f32 %v131_v1, 0.0  ;;  %v3173_v1 = vld [vmem:[#allocation5 + $0x130] ss:$0 sm:$0xff] }
 0x105   :  { %v138_v4 = vmax.f32 %v133_v3, 0.0 }
 0x107   :  { %242 = vmatprep.mubr.f32.mxu1 %v138_v4 }
 0x108   :  { %243 = vmatmul.mubr.f32.gmra.mrb[6].mxu1 %v137_v5 }
 0x109   :  { %3516 = vmatprep.mubr.msk.f32.mxu1 %vm4268_vm2, %v4266_v0 }
 0x1d7   :  { %v3286_v15 = vpop.f32.mrb[4].mxu1 }
 0x1d8   :  { %v3287_v17 = vpop.f32.mrb[5].mxu1 }
 0x1d9   :  { %v3288_v18 = vadd.f32 %v3287_v17, %v3286_v15  ;;  %v253_v17 = vld [vmem:[#allocation5 + $0x398] sm:$0xff] }
 0x1db   :  { %v4328_v19 = vadd.f32 %v3288_v18, %v171_v16  ;;  %v3289_v20 = vpop.f32.mrb[6].mxu1  ;;  %v252_v16 = vld [vmem:[#allocation5 + $0x390] sm:$0xff] }
 0x1dc   :  { %v3290_v22 = vpop.f32.mrb[7].mxu1  ;;  %v4394_v18 = vpack.c.bf16 %v253_v17, %v252_v16  ;;  %v1174_v16 = vld [vmem:[#allocation5 + $0x1f8] sm:$0xff] }
 0x1dd   :  { %v3291_v25 = vadd.f32 %v3290_v22, %v3289_v20  ;;  %3472 = vmatprep.mubr.msk.f32.mxu0 %vm265_vm1, %v4328_v19  ;;  %v254_v20 = vld [vmem:[#allocation5 + $0x3a0] sm:$0xff] }
 0x1df   :  { %v4332_v26 = vadd.f32 %v3291_v25, %v172_v21  ;;  %v255_v21 = vld [vmem:[#allocation5 + $0x3a8] sm:$0xff] }
 0x1e0   :  { %v4396_v22 = vpack.c.bf16 %v255_v21, %v254_v20  ;;  %v1175_v20 = vld [vmem:[#allocation5 + $0x200] sm:$0xff] }
 0x1e1   :  { %3473 = vmatmul.mubr.msk.f32.vlgmr.msra.gmra.mrb[0].mxu0 %vm265_vm1, %v4332_v26  ;;  %v3846_v21 = vpack.c.bf16 %v1175_v20, %v1174_v16  ;;  %v1314_v20 = vld [vmem:[#allocation5 + $0x248] sm:$0xff] }
 0x1e2   :  { %3777 = vmatpush3.bf16.msra.mxu0 %v3774_v14  ;;  %3483 = vmatprep.mubr.msk.f32.mxu0 %vm265_vm1, %v4328_v19 }
 0x1e3   :  { %3779 = vmatprep.subr.bf16.mxu0 %v3778_v27 }
 0x1e6   :  { %3781 = vmatpush3.bf16.msra.mxu0 %v3778_v27 }
 0x1e7   :  { %3783 = vmatprep.subr.bf16.mxu0 %v3782_v30 }
 0x1e9   :  { %3484 = vmatmul.mubr.msk.f32.vlgmr.msra.gmra.mrb[2].mxu0 %vm265_vm1, %v4332_v26 }
 0x1ea   :  { %3785 = vmatpush3.bf16.msra.mxu0 %v3782_v30  ;;  %3494 = vmatprep.mubr.msk.f32.mxu0 %vm265_vm1, %v4328_v19 }
 0x1eb   :  { %3787 = vmatprep.subr.bf16.mxu0 %v3786_v33 }
 0x1ee   :  { %3789 = vmatpush3.bf16.msra.mxu0 %v3786_v33 }
 0x1ef   :  { %3790 = vmatprep.subr.bf16.mxu0 %v4267_v34 }
 0x1f1   :  { %3495 = vmatmul.mubr.msk.f32.vlgmr.msra.gmra.mrb[4].mxu0 %vm265_vm1, %v4332_v26 }
 0x1f2   :  { %3505 = vmatprep.mubr.msk.f32.mxu0 %vm4268_vm2, %v4266_v0 }
 0x2b4   :  { %v3474_v35 = vpop.f32.mrb[0].mxu0 }
 0x2b5   :  { %v338_v36 = vpop.f32.mrb[1].mxu0  ;;  %v344_v4 = vadd.f32 %v3474_v35, %v3173_v1 }
 0x2b6   :  { %v339_v5 = vadd.f32 %v3173_v1, %v338_v36 }
 0x2bc   :  { %v3485_v40 = vpop.f32.mrb[2].mxu0 }
 0x2bd   :  { %v428_v41 = vadd.f32 %v3485_v40, %v3176_v37  ;;  %v422_v42 = vpop.f32.mrb[3].mxu0 }
 0x2be   :  { %v423_v43 = vadd.f32 %v3176_v37, %v422_v42  ;;  %v945_v42 = vld [vmem:[#allocation5 + $0x190] sm:$0xff] }
 0x2bf   :  { %v519_v44 = vmul.f32 %v428_v41, %v4350_v38  ;;  %v520_v45 = vmul.f32 %v428_v41, %v4352_v39  ;;  %v521_v55 = vmul.f32 %v428_v41, %v4364_v50  ;;  %v522_v56 = vmul.f32 %v428_v41, %v4366_v51  ;;  %v944_v41 = vld [vmem:[#allocation5 + $0x188] sm:$0xff] }
 0x2c0   :  { %v515_v46 = vmul.f32 %v423_v43, %v4350_v38  ;;  %v516_v47 = vmul.f32 %v423_v43, %v4352_v39  ;;  %v517_v59 = vmul.f32 %v423_v43, %v4364_v50  ;;  %v518_v60 = vmul.f32 %v423_v43, %v4366_v51 }
 0x2c1   :  { %v3799_v49 = vpack.c.bf16 %v520_v45, %v519_v44  ;;  %v3803_v61 = vpack.c.bf16 %v522_v56, %v521_v55  ;;  %v3826_v43 = vpack.c.bf16 %v945_v42, %v944_v41 }
 0x2c2   :  { %v3791_v52 = vpack.c.bf16 %v516_v47, %v515_v46  ;;  %v3795_v63 = vpack.c.bf16 %v518_v60, %v517_v59  ;;  %v946_v46 = vld [vmem:[#allocation5 + $0x198] sm:$0xff]  ;;  %v947_v47 = vld [vmem:[#allocation5 + $0x1a0] sm:$0xff]  ;;  %v3196_v60 = vld [vmem:[#allocation5 + $0x1a8] ss:$0 sm:$0xff] }
 0x2c3   :  { %3801 = vmatpush3.bf16.xpose.msk.msra.mxu1 %vm4360_vm3, %v3799_v49  ;;  %v3830_v55 = vpack.c.bf16 %v947_v47, %v946_v46  ;;  %v3199_v46 = vld [vmem:[#allocation5 + $0x1b0] ss:$0 sm:$0xff] }
 0x2c4   :  { %v3496_v54 = vpop.f32.mrb[4].mxu0  ;;  %3793 = vmatpush3.bf16.xpose.msk.msra.mxu0 %vm4360_vm3, %v3791_v52  ;;  %3802 = vmatprep.subr.bf16.mxu1 %v4267_v34 }
 0x2c5   :  { %v512_v57 = vadd.f32 %v3496_v54, %v3179_v53  ;;  %v506_v58 = vpop.f32.mrb[5].mxu0  ;;  %3794 = vmatprep.subr.bf16.mxu0 %v4267_v34 }
 0x2c6   :  { %v507_v62 = vadd.f32 %v3179_v53, %v506_v58 }
 0x2c7   :  { %v527_v31 = vmul.f32 %v512_v57, %v4350_v38  ;;  %v528_v32 = vmul.f32 %v512_v57, %v4352_v39  ;;  %v529_v35 = vmul.f32 %v512_v57, %v4364_v50  ;;  %v530_v36 = vmul.f32 %v512_v57, %v4366_v51 }
 0x2c8   :  { %v523_v2 = vmul.f32 %v507_v62, %v4350_v38  ;;  %v524_v3 = vmul.f32 %v507_v62, %v4352_v39  ;;  %v525_v6 = vmul.f32 %v507_v62, %v4364_v50  ;;  %v526_v7 = vmul.f32 %v507_v62, %v4366_v51 }
 0x2c9   :  { %v3821_v37 = vpack.c.bf16 %v528_v32, %v527_v31  ;;  %v3824_v40 = vpack.c.bf16 %v530_v36, %v529_v35 }
 0x2ca   :  { %v3815_v8 = vpack.c.bf16 %v524_v3, %v523_v2  ;;  %v3818_v9 = vpack.c.bf16 %v526_v7, %v525_v6 }
 0x2cb   :  { %3805 = vmatpush3.bf16.xpose.msk.msra.mxu1 %vm4360_vm3, %v3803_v61 }
 0x2cc   :  { %3797 = vmatpush3.bf16.xpose.msk.msra.mxu0 %vm4360_vm3, %v3795_v63  ;;  %3814 = vmatprep.subr.bf16.mxu1 %v4267_v34 }
 0x2cd   :  { %3807 = vmatprep.subr.bf16.mxu0 %v4394_v18 }
 0x2d2   :  { %3517 = vmatmul.mubr.msk.f32.vlgmr.msra.gmra.mrb[8].mxu1 %vm265_vm1, %v344_v4 }
 0x2d3   :  { %3506 = vmatmul.mubr.msk.f32.vlgmr.msra.gmra.mrb[6].mxu0 %vm265_vm1, %v339_v5  ;;  %3816 = vmatpush3.bf16.msra.mxu1 %v3815_v8 }
 0x2d4   :  { %3817 = vmatprep.subr.bf16.mxu1 %v4267_v34  ;;  %3538 = vmatprep.mubr.msk.f32.mxu1 %vm4268_vm2, %v4266_v0 }
 0x2d5   :  { %3809 = vmatpush3.bf16.msra.mxu0 %v4394_v18 }
 0x2d6   :  { %3811 = vmatprep.subr.bf16.mxu0 %v4396_v22 }
 0x2d7   :  { %3819 = vmatpush3.bf16.msra.mxu1 %v3818_v9 }
 0x2d8   :  { %3827 = vmatprep.subr.bf16.mxu1 %v3826_v43 }
 0x2d9   :  { %3813 = vmatpush3.bf16.msra.mxu0 %v4396_v22 }
 0x2da   :  { %3820 = vmatprep.subr.bf16.mxu0 %v4267_v34 }
 0x3a5   :  { %v697_v10 = vpop.f32.mrb[8].mxu1 }
 0x3a6   :  { %v612_v11 = vpop.f32.mrb[6].mxu0  ;;  %v3518_v12 = vpop.f32.mrb[9].mxu1  ;;  %v704_v15 = vsel %vm265_vm1, %v697_v10, -inf }
 0x3a7   :  { %v3507_v13 = vpop.f32.mrb[7].mxu0  ;;  %v701_v14 = vsel %vm265_vm1, %v612_v11, -inf }
 0x3a8   :  { %702 = vmax.xlane.f32.xlu0 %v701_v14  ;;  %v1172_v14 = vld [vmem:[#allocation5 + $0x1e8] sm:$0xff] }
 0x3ac   :  { %705 = vmax.xlane.f32.xlu0 %v704_v15  ;;  %v1173_v15 = vld [vmem:[#allocation5 + $0x1f0] sm:$0xff] }
 0x3ad   :  { %v3842_v17 = vpack.c.bf16 %v1173_v15, %v1172_v14 }
 0x435   :  { %v703_v23 = vpop.xlane.xlu0 %702 }
 0x436   :  { %v707_v24 = vsub.f32 %v612_v11, %v703_v23  ;;  %v1081_v11 = vld [vmem:[#allocation5 + $0x1c8] sm:$0xff] }
 0x437   :  { %v1176_v23 = vld [vmem:[#allocation5 + $0x208] sm:$0xff] }
 0x438   :  { %v709_v25 = vmul.f32 1.442695, %v707_v24  ;;  %v1177_v24 = vld [vmem:[#allocation5 + $0x210] sm:$0xff] }
 0x439   :  { %v706_v27 = vpop.xlane.xlu0 %705 }
 0x43a   :  { %4152 = vpow2.f32 %v709_v25  ;;  %v708_v28 = vsub.f32 %v697_v10, %v706_v27  ;;  %v1080_v10 = vld [vmem:[#allocation5 + $0x1c0] sm:$0xff]  ;;  %v3850_v25 = vpack.c.bf16 %v1177_v24, %v1176_v23  ;;  %v1488_v24 = vld [vmem:[#allocation5 + $0x298] sm:$0xff] }
 0x43b   :  { %v3834_v12 = vpack.c.bf16 %v1081_v11, %v1080_v10 }
 0x43c   :  { %v711_v29 = vmul.f32 1.442695, %v708_v28 }
 0x43e   :  { %4154 = vpow2.f32 %v711_v29 }
 0x444   :  { %v4153_v30 = vpop.eup %4152 }
 0x445   :  { %3527 = vmatprep.mubr.msk.f32.mxu0 %vm265_vm1, %v4153_v30 }
 0x448   :  { %v4155_v33 = vpop.eup %4154 }
 0x449   :  { %3528 = vmatmul.mubr.msk.f32.vlgmr.msra.gmra.mrb[8].mxu0 %vm265_vm1, %v4155_v33 }
 0x44a   :  { %3822 = vmatpush3.bf16.msra.mxu0 %v3821_v37  ;;  %3549 = vmatprep.mubr.msk.f32.mxu0 %vm4268_vm2, %v4266_v0 }
 0x44b   :  { %3823 = vmatprep.subr.bf16.mxu0 %v4267_v34 }
 0x44e   :  { %3825 = vmatpush3.bf16.msra.mxu0 %v3824_v40 }
 0x44f   :  { %3835 = vmatprep.subr.bf16.mxu0 %v3834_v12 }
 0x51c   :  { %v3529_v44 = vpop.f32.mrb[8].mxu0 }
 0x51d   :  { %4156 = vrcp.f32 %v3529_v44  ;;  %v785_v45 = vpop.f32.mrb[9].mxu0 }
 0x51e   :  { %4158 = vrcp.f32 %v785_v45 }
 0x527   :  { %v4157_v49 = vpop.eup %4156 }
 0x528   :  { %v4159_v52 = vpop.eup %4158  ;;  %v797_v53 = vmul.f32 %v4157_v49, %v4155_v33 }
 0x529   :  { %v796_v54 = vmul.f32 %v4159_v52, %v4153_v30 }
 0x52a   :  { %3550 = vmatmul.mubr.msk.f32.vlgmr.msra.gmra.mrb[10].mxu0 %vm265_vm1, %v797_v53  ;;  %v3200_v53 = vld [vmem:[#allocation5 + $0x1b8] ss:$0 sm:$0xff] }
 0x52b   :  { %3539 = vmatmul.mubr.msk.f32.vlgmr.msra.gmra.mrb[10].mxu1 %vm265_vm1, %v796_v54  ;;  %3837 = vmatpush3.bf16.msra.mxu0 %v3834_v12 }
 0x52c   :  { %3829 = vmatpush3.bf16.msra.mxu1 %v3826_v43 }
 0x52d   :  { %3831 = vmatprep.subr.bf16.mxu1 %v3830_v55 }
 0x530   :  { %3833 = vmatpush3.bf16.msra.mxu1 %v3830_v55 }
 0x531   :  { %3843 = vmatprep.subr.bf16.mxu1 %v3842_v17 }
 0x5fd   :  { %v940_v56 = vpop.f32.mrb[10].mxu0 }
 0x5fe   :  { %v867_v57 = vpop.f32.mrb[10].mxu1  ;;  %v3551_v58 = vpop.f32.mrb[11].mxu0 }
 0x5ff   :  { %v3540_v59 = vpop.f32.mrb[11].mxu1  ;;  %3560 = vmatprep.mubr.msk.f32.mxu1 %vm265_vm1, %v867_v57 }
 0x600   :  { %3561 = vmatmul.mubr.msk.f32.vlgmr.msra.gmra.mrb[12].mxu1 %vm265_vm1, %v940_v56  ;;  %v1178_v59 = vld [vmem:[#allocation5 + $0x218] sm:$0xff] }
 0x601   :  { %3845 = vmatpush3.bf16.msra.mxu1 %v3842_v17  ;;  %v1313_v17 = vld [vmem:[#allocation5 + $0x240] sm:$0xff] }
 0x602   :  { %3847 = vmatprep.subr.bf16.mxu1 %v3846_v21  ;;  %v3858_v23 = vpack.c.bf16 %v1314_v20, %v1313_v17 }
 0x605   :  { %3849 = vmatpush3.bf16.msra.mxu1 %v3846_v21  ;;  %v1487_v21 = vld [vmem:[#allocation5 + $0x290] sm:$0xff] }
 0x606   :  { %3851 = vmatprep.subr.bf16.mxu1 %v3850_v25 }
 0x609   :  { %3853 = vmatpush3.bf16.msra.mxu1 %v3850_v25  ;;  %v1315_v25 = vld [vmem:[#allocation5 + $0x250] sm:$0xff] }
 0x6d3   :  { %v3562_v61 = vpop.f32.mrb[12].mxu1 }
 0x6d4   :  { %v1031_v62 = vadd.f32 %v3562_v61, %v3196_v60  ;;  %v1025_v63 = vpop.f32.mrb[13].mxu1 }
 0x6d5   :  { %v1026_v1 = vadd.f32 %v3196_v60, %v1025_v63  ;;  %v1179_v60 = vld [vmem:[#allocation5 + $0x220] sm:$0xff] }
 0x6d6   :  { %v1035_v2 = vadd.f32 %v1031_v62, %v4332_v26  ;;  %v1083_v26 = vld [vmem:[#allocation5 + $0x1d8] sm:$0xff]  ;;  %v3854_v61 = vpack.c.bf16 %v1179_v60, %v1178_v59  ;;  %v3201_v62 = vld [vmem:[#allocation5 + $0x1e0] ss:$0 sm:$0xff]  ;;  %v3207_v59 = vld [vmem:[#allocation5 + $0x230] ss:$0 sm:$0xff] }
 0x6d7   :  { %v1034_v3 = vadd.f32 %v1026_v1, %v4328_v19  ;;  %v1082_v19 = vld [vmem:[#allocation5 + $0x1d0] sm:$0xff] }
 0x6d8   :  { %v1041_v4 = vsel %vm265_vm1, %v1035_v2, 0.0  ;;  %v1045_v8 = vmul.f32 %v1035_v2, %v1035_v2  ;;  %v3838_v13 = vpack.c.bf16 %v1083_v26, %v1082_v19  ;;  %3855 = vmatprep.subr.bf16.mxu1 %v3854_v61 }
 0x6d9   :  { %1042 = vadd.xlane.f32.xlu1 %v1041_v4  ;;  %v1044_v5 = vmul.f32 %v1034_v3, %v1034_v3  ;;  %v1038_v7 = vsel %vm265_vm1, %v1034_v3, 0.0  ;;  %3857 = vmatpush3.bf16.msra.mxu1 %v3854_v61 }
 0x6da   :  { %v1049_v9 = vsel %vm265_vm1, %v1045_v8, 0.0  ;;  %3839 = vmatprep.subr.bf16.mxu0 %v3838_v13 }
 0x6db   :  { %v1046_v6 = vsel %vm265_vm1, %v1044_v5, 0.0  ;;  %3841 = vmatpush3.bf16.msra.mxu0 %v3838_v13 }
 0x6dc   :  { %1047 = vadd.xlane.f32.xlu0 %v1046_v6  ;;  %v3204_v6 = vld [vmem:[#allocation5 + $0x228] ss:$0 sm:$0xff]  ;;  %3859 = vmatprep.subr.bf16.mxu0 %v3858_v23 }
 0x6dd   :  { %1039 = vadd.xlane.f32.xlu1 %v1038_v7 }
 0x6e1   :  { %1050 = vadd.xlane.f32.xlu1 %v1049_v9 }
 0x766   :  { %v1043_v27 = vpop.xlane.xlu1 %1042 }
 0x767   :  { %v1053_v30 = vmul.f32 0.03125, %v1043_v27  ;;  %v1316_v27 = vld [vmem:[#allocation5 + $0x258] sm:$0xff] }
 0x769   :  { %v1048_v28 = vpop.xlane.xlu0 %1047  ;;  %v1057_v36 = vmul.f32 %v1053_v30, %v1053_v30  ;;  %v1061_v47 = vsub.f32 %v1035_v2, %v1053_v30  ;;  %v1489_v30 = vld [vmem:[#allocation5 + $0x2a0] sm:$0xff] }
 0x76a   :  { %v1040_v29 = vpop.xlane.xlu1 %1039  ;;  %v1054_v32 = vmul.f32 0.03125, %v1048_v28  ;;  %v3874_v28 = vpack.c.bf16 %v1488_v24, %v1487_v21 }
 0x76b   :  { %v1052_v31 = vmul.f32 0.03125, %v1040_v29  ;;  %v3862_v29 = vpack.c.bf16 %v1316_v27, %v1315_v25 }
 0x76c   :  { %3875 = vmatprep.subr.bf16.mxu1 %v3874_v28 }
 0x76d   :  { %v1056_v33 = vmul.f32 %v1052_v31, %v1052_v31  ;;  %v1060_v44 = vsub.f32 %v1034_v3, %v1052_v31  ;;  %v1490_v31 = vld [vmem:[#allocation5 + $0x2a8] sm:$0xff] }
 0x76e   :  { %v1051_v35 = vpop.xlane.xlu1 %1050 }
 0x76f   :  { %v1058_v37 = vsub.f32 %v1054_v32, %v1056_v33  ;;  %v1055_v40 = vmul.f32 0.03125, %v1051_v35  ;;  %v3878_v32 = vpack.c.bf16 %v1490_v31, %v1489_v30  ;;  %v1403_v33 = vld [vmem:[#allocation5 + $0x268] sm:$0xff]  ;;  %v1404_v35 = vld [vmem:[#allocation5 + $0x270] sm:$0xff] }
 0x771   :  { %v1062_v41 = vadd.f32 1e-05, %v1058_v37  ;;  %v1059_v42 = vsub.f32 %v1055_v40, %v1057_v36  ;;  %v3866_v36 = vpack.c.bf16 %v1404_v35, %v1403_v33  ;;  %v3209_v35 = vld [vmem:[#allocation5 + $0x260] ss:$0 sm:$0xff] }
 0x773   :  { %4160 = vrsqrt.f32 %v1062_v41  ;;  %v1063_v43 = vadd.f32 1e-05, %v1059_v42 }
 0x775   :  { %4162 = vrsqrt.f32 %v1063_v43 }
 0x77d   :  { %v4161_v45 = vpop.eup %4160 }
 0x77e   :  { %v1066_v49 = vmul.f32 %v4161_v45, %v1060_v44 }
 0x77f   :  { %v4163_v52 = vpop.eup %4162 }
 0x780   :  { %v1072_v54 = vmul.f32 %v3199_v46, %v1066_v49  ;;  %v1067_v55 = vmul.f32 %v4163_v52, %v1061_v47 }
 0x782   :  { %v1073_v56 = vmul.f32 %v3199_v46, %v1067_v55  ;;  %v1078_v57 = vadd.f32 %v3200_v53, %v1072_v54 }
 0x784   :  { %v1079_v58 = vadd.f32 %v3200_v53, %v1073_v56  ;;  %3571 = vmatprep.mubr.msk.f32.mxu0 %vm265_vm1, %v1078_v57 }
 0x786   :  { %3572 = vmatmul.mubr.msk.f32.vlgmr.msra.gmra.mrb[12].mxu0 %vm265_vm1, %v1079_v58 }
 0x787   :  { %3861 = vmatpush3.bf16.msra.mxu0 %v3858_v23 }
 0x788   :  { %3863 = vmatprep.subr.bf16.mxu0 %v3862_v29 }
 0x78b   :  { %3865 = vmatpush3.bf16.msra.mxu0 %v3862_v29 }
 0x78c   :  { %3867 = vmatprep.subr.bf16.mxu0 %v3866_v36 }
 0x859   :  { %v3573_v63 = vpop.f32.mrb[12].mxu0 }
 0x85a   :  { %v1167_v1 = vadd.f32 %v3573_v63, %v3201_v62  ;;  %v1161_v2 = vpop.f32.mrb[13].mxu0  ;;  %v3208_v63 = vld [vmem:[#allocation5 + $0x238] ss:$0 sm:$0xff] }
 0x85b   :  { %v1162_v3 = vadd.f32 %v3201_v62, %v1161_v2 }
 0x85c   :  { %v1171_v5 = vmax.f32 %v1167_v1, 0.0 }
 0x85d   :  { %v1170_v4 = vmax.f32 %v1162_v3, 0.0  ;;  %v1405_v3 = vld [vmem:[#allocation5 + $0x278] sm:$0xff] }
 0x85f   :  { %3590 = vmatprep.mubr.msk.f32.mxu1 %vm1185_vm4, %v1170_v4  ;;  %v1406_v4 = vld [vmem:[#allocation5 + $0x280] sm:$0xff] }
 0x860   :  { %3591 = vmatmul.mubr.msk.f32.vlgmr.msra.gmra.mrb[14].mxu1 %vm1185_vm4, %v1171_v5 }
 0x861   :  { %3877 = vmatpush3.bf16.msra.mxu1 %v3874_v28 }
 0x862   :  { %3879 = vmatprep.subr.bf16.mxu1 %v3878_v32 }
 0x865   :  { %3881 = vmatpush3.bf16.msra.mxu1 %v3878_v32 }
 0x866   :  { %3890 = vmatprep.subr.bf16.mxu1 %v4267_v34 }
 0x933   :  { %v3592_v7 = vpop.f32.mrb[14].mxu1 }
 0x934   :  { %v1264_v8 = vadd.f32 %v3592_v7, %v3204_v6  ;;  %v1258_v9 = vpop.f32.mrb[15].mxu1  ;;  %v3870_v7 = vpack.c.bf16 %v1406_v4, %v1405_v3  ;;  %v2002_v4 = vld [vmem:[#allocation5 + $0x2c8] sm:$0xff] }
 0x935   :  { %v1259_v10 = vadd.f32 %v3204_v6, %v1258_v9 }
 0x936   :  { %v1268_v11 = vadd.f32 %v1264_v8, %v1079_v58  ;;  %v3215_v8 = vld [vmem:[#allocation5 + $0x2b0] ss:$0 sm:$0xff] }
 0x937   :  { %v1267_v12 = vadd.f32 %v1259_v10, %v1078_v57 }
 0x938   :  { %v1274_v19 = vsel %vm265_vm1, %v1268_v11, 0.0  ;;  %v1278_v26 = vmul.f32 %v1268_v11, %v1268_v11 }
 0x939   :  { %1275 = vadd.xlane.f32.xlu1 %v1274_v19  ;;  %v1271_v13 = vsel %vm265_vm1, %v1267_v12, 0.0  ;;  %v1277_v14 = vmul.f32 %v1267_v12, %v1267_v12 }
 0x93a   :  { %1272 = vadd.xlane.f32.xlu0 %v1271_v13  ;;  %v1282_v15 = vsel %vm265_vm1, %v1278_v26, 0.0  ;;  %v3212_v26 = vld [vmem:[#allocation5 + $0x288] ss:$0 sm:$0xff] }
 0x93b   :  { %v1279_v16 = vsel %vm265_vm1, %v1277_v14, 0.0 }
 0x93d   :  { %1283 = vadd.xlane.f32.xlu1 %v1282_v15 }
 0x93e   :  { %1280 = vadd.xlane.f32.xlu0 %v1279_v16 }
 0x9c6   :  { %v1276_v37 = vpop.xlane.xlu1 %1275 }
 0x9c7   :  { %v1286_v40 = vmul.f32 0.03125, %v1276_v37  ;;  %v1273_v41 = vpop.xlane.xlu0 %1272 }
 0x9c8   :  { %v1285_v42 = vmul.f32 0.03125, %v1273_v41 }
 0x9c9   :  { %v1290_v44 = vmul.f32 %v1286_v40, %v1286_v40  ;;  %v1294_v56 = vsub.f32 %v1268_v11, %v1286_v40 }
 0x9ca   :  { %v1284_v43 = vpop.xlane.xlu1 %1283  ;;  %v1289_v47 = vmul.f32 %v1285_v42, %v1285_v42  ;;  %v1293_v58 = vsub.f32 %v1267_v12, %v1285_v42 }
 0x9cb   :  { %v1288_v45 = vmul.f32 0.03125, %v1284_v43  ;;  %v1281_v46 = vpop.xlane.xlu0 %1280 }
 0x9cc   :  { %v1287_v49 = vmul.f32 0.03125, %v1281_v46 }
 0x9cd   :  { %v1292_v52 = vsub.f32 %v1288_v45, %v1290_v44 }
 0x9ce   :  { %v1291_v53 = vsub.f32 %v1287_v49, %v1289_v47 }
 0x9cf   :  { %v1296_v54 = vadd.f32 1e-05, %v1292_v52 }
 0x9d0   :  { %v1295_v55 = vadd.f32 1e-05, %v1291_v53 }
 0x9d1   :  { %4164 = vrsqrt.f32 %v1296_v54 }
 0x9d2   :  { %4166 = vrsqrt.f32 %v1295_v55 }
 0x9db   :  { %v4165_v57 = vpop.eup %4164 }
 0x9dc   :  { %v4167_v60 = vpop.eup %4166  ;;  %v1300_v61 = vmul.f32 %v4165_v57, %v1294_v56 }
 0x9dd   :  { %v1299_v62 = vmul.f32 %v4167_v60, %v1293_v58 }
 0x9de   :  { %v1306_v1 = vmul.f32 %v3207_v59, %v1300_v61 }
 0x9df   :  { %v1305_v2 = vmul.f32 %v3207_v59, %v1299_v62 }
 0x9e0   :  { %v4433_v6 = vadd.f32 %v3208_v63, %v1306_v1 }
 0x9e1   :  { %v4431_v5 = vadd.f32 %v3208_v63, %v1305_v2  ;;  %v2001_v2 = vld [vmem:[#allocation5 + $0x2c0] sm:$0xff] }
 0x9e3   :  { %3601 = vmatprep.mubr.msk.f32.mxu0 %vm265_vm1, %v4431_v5  ;;  %3623 = vmatprep.mubr.msk.f32.mxu1 %vm265_vm1, %v4431_v5 }
 0x9e4   :  { %3602 = vmatmul.mubr.msk.f32.vlgmr.msra.gmra.mrb[14].mxu0 %vm265_vm1, %v4433_v6  ;;  %3624 = vmatmul.mubr.msk.f32.vlgmr.msra.gmra.mrb[16].mxu1 %vm265_vm1, %v4433_v6 }
 0x9e5   :  { %3869 = vmatpush3.bf16.msra.mxu0 %v3866_v36  ;;  %3612 = vmatprep.mubr.msk.f32.mxu0 %vm265_vm1, %v4431_v5 }
 0x9e6   :  { %3871 = vmatprep.subr.bf16.mxu0 %v3870_v7  ;;  %3645 = vmatprep.mubr.msk.f32.mxu1 %vm4268_vm2, %v4266_v0 }
 0x9e9   :  { %3873 = vmatpush3.bf16.msra.mxu0 %v3870_v7  ;;  %v2003_v7 = vld [vmem:[#allocation5 + $0x2d0] sm:$0xff] }
 0x9ea   :  { %3882 = vmatprep.subr.bf16.mxu0 %v4267_v34 }
 0x9ec   :  { %3613 = vmatmul.mubr.msk.f32.vlgmr.msra.gmra.mrb[16].mxu0 %vm265_vm1, %v4433_v6 }
 0x9ed   :  { %3634 = vmatprep.mubr.msk.f32.mxu0 %vm4268_vm2, %v4266_v0 }
 0xab7   :  { %v3603_v9 = vpop.f32.mrb[14].mxu0  ;;  %v3625_v10 = vpop.f32.mrb[16].mxu1 }
 0xab8   :  { %v4452_v11 = vadd.f32 %v3625_v10, %v3215_v8  ;;  %v1394_v12 = vpop.f32.mrb[15].mxu0  ;;  %v1562_v19 = vpop.f32.mrb[17].mxu1  ;;  %v1400_v40 = vadd.f32 %v3603_v9, %v3209_v35 }
 0xab9   :  { %v1563_v31 = vadd.f32 %v3215_v8, %v1562_v19  ;;  %v1395_v41 = vadd.f32 %v3209_v35, %v1394_v12  ;;  %v3922_v12 = vpack.c.bf16 %v2003_v7, %v2002_v4  ;;  %v2138_v35 = vld [vmem:[#allocation5 + $0x300] sm:$0xff] }
 0xaba   :  { %v1584_v59 = vmul.f32 %v4452_v11, %v4352_v39  ;;  %v1585_v62 = vmul.f32 %v4452_v11, %v4364_v50  ;;  %v1586_v63 = vmul.f32 %v4452_v11, %v4366_v51 }
 0xabb   :  { %v1579_v36 = vmul.f32 %v1563_v31, %v4350_v38  ;;  %v1580_v37 = vmul.f32 %v1563_v31, %v4352_v39  ;;  %v1581_v42 = vmul.f32 %v1563_v31, %v4364_v50  ;;  %v1582_v43 = vmul.f32 %v1563_v31, %v4366_v51 }
 0xabd   :  { %v3907_v44 = vpack.c.bf16 %v1580_v37, %v1579_v36  ;;  %v3910_v48 = vpack.c.bf16 %v1582_v43, %v1581_v42  ;;  %v2139_v36 = vld [vmem:[#allocation5 + $0x308] sm:$0xff]  ;;  %v2228_v37 = vld [vmem:[#allocation5 + $0x318] sm:$0xff]  ;;  %v2231_v43 = vld [vmem:[#allocation5 + $0x330] sm:$0xff] }
 0xabf   :  { %v3614_v13 = vpop.f32.mrb[16].mxu0 }
 0xac0   :  { %v1484_v14 = vadd.f32 %v3614_v13, %v3212_v26  ;;  %v1478_v15 = vpop.f32.mrb[17].mxu0 }
 0xac1   :  { %v1479_v16 = vadd.f32 %v3212_v26, %v1478_v15  ;;  %v3232_v15 = vld [vmem:[#allocation5 + $0x2d8] ss:$0 sm:$0xff] }
 0xac2   :  { %v1575_v17 = vmul.f32 %v1484_v14, %v4350_v38  ;;  %v1576_v20 = vmul.f32 %v1484_v14, %v4352_v39  ;;  %v1577_v27 = vmul.f32 %v1484_v14, %v4364_v50  ;;  %v1578_v28 = vmul.f32 %v1484_v14, %v4366_v51 }
 0xac3   :  { %v1571_v21 = vmul.f32 %v1479_v16, %v4350_v38  ;;  %v1572_v23 = vmul.f32 %v1479_v16, %v4352_v39  ;;  %v1573_v29 = vmul.f32 %v1479_v16, %v4364_v50  ;;  %v1574_v30 = vmul.f32 %v1479_v16, %v4366_v51  ;;  %v2000_v39 = vld [vmem:[#allocation5 + $0x2b8] sm:$0xff] }
 0xac4   :  { %v3891_v24 = vpack.c.bf16 %v1576_v20, %v1575_v17  ;;  %v3895_v32 = vpack.c.bf16 %v1578_v28, %v1577_v27  ;;  %v3918_v3 = vpack.c.bf16 %v2001_v2, %v2000_v39 }
 0xac5   :  { %v3883_v25 = vpack.c.bf16 %v1572_v23, %v1571_v21  ;;  %v3887_v33 = vpack.c.bf16 %v1574_v30, %v1573_v29 }
 0xac6   :  { %3893 = vmatpush3.bf16.xpose.msk.msra.mxu1 %vm4360_vm3, %v3891_v24 }
 0xac7   :  { %3885 = vmatpush3.bf16.xpose.msk.msra.mxu0 %vm4360_vm3, %v3883_v25  ;;  %3894 = vmatprep.subr.bf16.mxu1 %v4267_v34 }
 0xac8   :  { %3886 = vmatprep.subr.bf16.mxu0 %v4267_v34 }
 0xace   :  { %3897 = vmatpush3.bf16.xpose.msk.msra.mxu1 %vm4360_vm3, %v3895_v32  ;;  %v2136_v32 = vld [vmem:[#allocation5 + $0x2f0] sm:$0xff] }
 0xacf   :  { %3889 = vmatpush3.bf16.xpose.msk.msra.mxu0 %vm4360_vm3, %v3887_v33  ;;  %3906 = vmatprep.subr.bf16.mxu1 %v4267_v34  ;;  %v2137_v33 = vld [vmem:[#allocation5 + $0x2f8] sm:$0xff] }
 0xad0   :  { %3899 = vmatprep.subr.bf16.mxu0 %v4394_v18 }
 0xad5   :  { %3646 = vmatmul.mubr.msk.f32.vlgmr.msra.gmra.mrb[18].mxu1 %vm265_vm1, %v1400_v40  ;;  %v2229_v40 = vld [vmem:[#allocation5 + $0x320] sm:$0xff] }
 0xad6   :  { %3635 = vmatmul.mubr.msk.f32.vlgmr.msra.gmra.mrb[18].mxu0 %vm265_vm1, %v1395_v41  ;;  %3908 = vmatpush3.bf16.msra.mxu1 %v3907_v44  ;;  %v2230_v41 = vld [vmem:[#allocation5 + $0x328] sm:$0xff]  ;;  %v3934_v42 = vpack.c.bf16 %v2229_v40, %v2228_v37  ;;  %v2405_v37 = vld [vmem:[#allocation2 + $0x60] sm:$0xff] }
 0xad7   :  { %3909 = vmatprep.subr.bf16.mxu1 %v4267_v34  ;;  %3901 = vmatpush3.bf16.msra.mxu0 %v4394_v18  ;;  %v3938_v44 = vpack.c.bf16 %v2231_v43, %v2230_v41  ;;  %v2408_v40 = vld [vmem:[#allocation2 + $0x78] sm:$0xff]  ;;  %v2410_v41 = vld [vmem:[#allocation2 + $0x88] sm:$0xff] }
 0xad8   :  { %3903 = vmatprep.subr.bf16.mxu0 %v4396_v22  ;;  %3667 = vmatprep.mubr.msk.f32.mxu1 %vm4268_vm2, %v4266_v0  ;;  %v3954_v43 = vpack.c.bf16 %v2410_v41, %v2408_v40  ;;  %v2448_v40 = vld [vmem:[#allocation2 + $0x1b8] sm:$0xff]  ;;  %v2450_v41 = vld [vmem:[#allocation2 + $0x1c8] sm:$0xff] }
 0xada   :  { %3911 = vmatpush3.bf16.msra.mxu1 %v3910_v48  ;;  %v2232_v48 = vld [vmem:[#allocation5 + $0x338] sm:$0xff] }
 0xadb   :  { %3905 = vmatpush3.bf16.msra.mxu0 %v4396_v22  ;;  %v1583_v22 = vmul.f32 %v4452_v11, %v4350_v38  ;;  %v3916_v38 = vpack.c.bf16 %v1586_v63, %v1585_v62  ;;  %3919 = vmatprep.subr.bf16.mxu1 %v3918_v3 }
 0xadc   :  { %3912 = vmatprep.subr.bf16.mxu0 %v4267_v34 }
 0xadd   :  { %v3913_v1 = vpack.c.bf16 %v1584_v59, %v1583_v22 }
 0xba8   :  { %v1753_v45 = vpop.f32.mrb[18].mxu1 }
 0xba9   :  { %v1668_v46 = vpop.f32.mrb[18].mxu0  ;;  %v3647_v47 = vpop.f32.mrb[19].mxu1  ;;  %v1760_v49 = vsel %vm265_vm1, %v1753_v45, -inf }
 0xbaa   :  { %1761 = vmax.xlane.f32.xlu1 %v1760_v49  ;;  %v3636_v52 = vpop.f32.mrb[19].mxu0  ;;  %v1757_v18 = vsel %vm265_vm1, %v1668_v46, -inf }
 0xbab   :  { %1758 = vmax.xlane.f32.xlu0 %v1757_v18 }
 0xc37   :  { %v1762_v53 = vpop.xlane.xlu1 %1761 }
 0xc38   :  { %v1764_v54 = vsub.f32 %v1753_v45, %v1762_v53  ;;  %v1759_v55 = vpop.xlane.xlu0 %1758  ;;  %v2233_v45 = vld [vmem:[#allocation5 + $0x340] sm:$0xff] }
 0xc39   :  { %v1763_v56 = vsub.f32 %v1668_v46, %v1759_v55  ;;  %v3942_v46 = vpack.c.bf16 %v2233_v45, %v2232_v48  ;;  %v2409_v48 = vld [vmem:[#allocation2 + $0x80] sm:$0xff]  ;;  %v2412_v45 = vld [vmem:[#allocation2 + $0x98] sm:$0xff] }
 0xc3a   :  { %v1767_v57 = vmul.f32 1.442695, %v1764_v54 }
 0xc3b   :  { %v1765_v58 = vmul.f32 1.442695, %v1763_v56 }
 0xc3d   :  { %4168 = vpow2.f32 %v1765_v58 }
 0xc3e   :  { %4170 = vpow2.f32 %v1767_v57 }
 0xc47   :  { %v4169_v60 = vpop.eup %4168 }
 0xc48   :  { %v4171_v61 = vpop.eup %4170  ;;  %3656 = vmatprep.mubr.msk.f32.mxu0 %vm265_vm1, %v4169_v60 }
 0xc49   :  { %3657 = vmatmul.mubr.msk.f32.vlgmr.msra.gmra.mrb[20].mxu0 %vm265_vm1, %v4171_v61 }
 0xc4a   :  { %3914 = vmatpush3.bf16.msra.mxu0 %v3913_v1  ;;  %3678 = vmatprep.mubr.msk.f32.mxu0 %vm4268_vm2, %v4266_v0 }
 0xc4b   :  { %3915 = vmatprep.subr.bf16.mxu0 %v4267_v34 }
 0xc4e   :  { %3917 = vmatpush3.bf16.msra.mxu0 %v3916_v38  ;;  %v3235_v38 = vld [vmem:[#allocation5 + $0x2e0] ss:$0 sm:$0xff] }
 0xd1c   :  { %v3658_v50 = vpop.f32.mrb[20].mxu0 }
 0xd1d   :  { %4172 = vrcp.f32 %v3658_v50  ;;  %v1841_v51 = vpop.f32.mrb[21].mxu0  ;;  %v3236_v50 = vld [vmem:[#allocation5 + $0x2e8] ss:$0 sm:$0xff] }
 0xd1e   :  { %4174 = vrcp.f32 %v1841_v51 }
 0xd27   :  { %v4173_v8 = vpop.eup %4172 }
 0xd28   :  { %v4175_v9 = vpop.eup %4174  ;;  %v1853_v10 = vmul.f32 %v4173_v8, %v4171_v61 }
 0xd29   :  { %v1852_v11 = vmul.f32 %v4175_v9, %v4169_v60  ;;  %v2234_v9 = vld [vmem:[#allocation5 + $0x348] sm:$0xff] }
 0xd2a   :  { %3679 = vmatmul.mubr.msk.f32.vlgmr.msra.gmra.mrb[22].mxu0 %vm265_vm1, %v1853_v10  ;;  %v2235_v10 = vld [vmem:[#allocation5 + $0x350] sm:$0xff] }
 0xd2b   :  { %3668 = vmatmul.mubr.msk.f32.vlgmr.msra.gmra.mrb[20].mxu1 %vm265_vm1, %v1852_v11  ;;  %v3946_v11 = vpack.c.bf16 %v2235_v10, %v2234_v9  ;;  %v2427_v9 = vld [vmem:[#allocation2 + $0x110] sm:$0xff]  ;;  %v2429_v10 = vld [vmem:[#allocation2 + $0x120] sm:$0xff] }
 0xd2c   :  { %3921 = vmatpush3.bf16.msra.mxu1 %v3918_v3 }
 0xd2d   :  { %3923 = vmatprep.subr.bf16.mxu1 %v3922_v12 }
 0xd30   :  { %3925 = vmatpush3.bf16.msra.mxu1 %v3922_v12  ;;  %v3237_v12 = vld [vmem:[#allocation5 + $0x310] ss:$0 sm:$0xff] }
 0xd31   :  { %3935 = vmatprep.subr.bf16.mxu1 %v3934_v42 }
 0xdfd   :  { %v1996_v19 = vpop.f32.mrb[22].mxu0 }
 0xdfe   :  { %v1923_v26 = vpop.f32.mrb[20].mxu1  ;;  %v3680_v13 = vpop.f32.mrb[23].mxu0 }
 0xdff   :  { %v3669_v14 = vpop.f32.mrb[21].mxu1  ;;  %3689 = vmatprep.mubr.msk.f32.mxu1 %vm265_vm1, %v1923_v26 }
 0xe00   :  { %3690 = vmatmul.mubr.msk.f32.vlgmr.msra.gmra.mrb[22].mxu1 %vm265_vm1, %v1996_v19 }
 0xe01   :  { %3937 = vmatpush3.bf16.msra.mxu1 %v3934_v42 }
 0xe02   :  { %3939 = vmatprep.subr.bf16.mxu1 %v3938_v44 }
 0xe05   :  { %3941 = vmatpush3.bf16.msra.mxu1 %v3938_v44  ;;  %v2407_v44 = vld [vmem:[#allocation2 + $0x70] sm:$0xff] }
 0xe06   :  { %3943 = vmatprep.subr.bf16.mxu1 %v3942_v46 }
 0xe09   :  { %3945 = vmatpush3.bf16.msra.mxu1 %v3942_v46  ;;  %v2414_v46 = vld [vmem:[#allocation2 + $0xa8] sm:$0xff] }
 0xe0a   :  { %3947 = vmatprep.subr.bf16.mxu1 %v3946_v11 }
 0xe0d   :  { %3949 = vmatpush3.bf16.msra.mxu1 %v3946_v11  ;;  %v2432_v11 = vld [vmem:[#allocation2 + $0x138] sm:$0xff] }
 0xed3   :  { %v3691_v16 = vpop.f32.mrb[22].mxu1 }
 0xed4   :  { %v2087_v17 = vadd.f32 %v3691_v16, %v3232_v15  ;;  %v2081_v20 = vpop.f32.mrb[23].mxu1 }
 0xed5   :  { %v2082_v21 = vadd.f32 %v3232_v15, %v2081_v20 }
 0xed6   :  { %v2091_v23 = vadd.f32 %v2087_v17, %v4433_v6  ;;  %v3926_v6 = vpack.c.bf16 %v2137_v33, %v2136_v32  ;;  %v3240_v17 = vld [vmem:[#allocation5 + $0x358] ss:$0 sm:$0xff] }
 0xed7   :  { %v2090_v24 = vadd.f32 %v2082_v21, %v4431_v5  ;;  %v3930_v5 = vpack.c.bf16 %v2139_v36, %v2138_v35  ;;  %v2404_v35 = vld [vmem:[#allocation2 + $0x58] sm:$0xff]  ;;  %v2403_v36 = vld [vmem:[#allocation2 + $0x50] sm:$0xff] }
 0xed8   :  { %v2097_v25 = vsel %vm265_vm1, %v2091_v23, 0.0  ;;  %v2101_v27 = vmul.f32 %v2091_v23, %v2091_v23  ;;  %3927 = vmatprep.subr.bf16.mxu0 %v3926_v6  ;;  %v3952_v42 = vpack.c.bf16 %v2405_v37, %v2403_v36  ;;  %v2445_v37 = vld [vmem:[#allocation2 + $0x1a0] sm:$0xff] }
 0xed9   :  { %2098 = vadd.xlane.f32.xlu1 %v2097_v25  ;;  %v2094_v28 = vsel %vm265_vm1, %v2090_v24, 0.0  ;;  %v2100_v29 = vmul.f32 %v2090_v24, %v2090_v24  ;;  %3929 = vmatpush3.bf16.msra.mxu0 %v3926_v6  ;;  %v2406_v6 = vld [vmem:[#allocation2 + $0x68] sm:$0xff] }
 0xeda   :  { %2095 = vadd.xlane.f32.xlu0 %v2094_v28  ;;  %v2105_v30 = vsel %vm265_vm1, %v2101_v27, 0.0  ;;  %3931 = vmatprep.subr.bf16.mxu0 %v3930_v5 }
 0xedb   :  { %v2102_v31 = vsel %vm265_vm1, %v2100_v29, 0.0 }
 0xedd   :  { %2106 = vadd.xlane.f32.xlu1 %v2105_v30  ;;  %3933 = vmatpush3.bf16.msra.mxu0 %v3930_v5  ;;  %v3950_v5 = vpack.c.bf16 %v2406_v6, %v2404_v35  ;;  %v2446_v35 = vld [vmem:[#allocation2 + $0x1a8] sm:$0xff] }
 0xede   :  { %2103 = vadd.xlane.f32.xlu0 %v2102_v31 }
 0xedf   :  { %3951 = vmatprep.subr.bf16.mxu0 %v3950_v5  ;;  %v2443_v5 = vld [vmem:[#allocation2 + $0x190] sm:$0xff] }
 0xf66   :  { %v2099_v47 = vpop.xlane.xlu1 %2098 }
 0xf67   :  { %v2109_v49 = vmul.f32 0.03125, %v2099_v47  ;;  %v2096_v52 = vpop.xlane.xlu0 %2095  ;;  %v3956_v47 = vpack.c.bf16 %v2409_v48, %v2407_v44  ;;  %v2447_v44 = vld [vmem:[#allocation2 + $0x1b0] sm:$0xff]  ;;  %v2449_v48 = vld [vmem:[#allocation2 + $0x1c0] sm:$0xff] }
 0xf68   :  { %v2108_v18 = vmul.f32 0.03125, %v2096_v52  ;;  %v2411_v52 = vld [vmem:[#allocation2 + $0x90] sm:$0xff] }
 0xf69   :  { %v2113_v54 = vmul.f32 %v2109_v49, %v2109_v49  ;;  %v2117_v62 = vsub.f32 %v2091_v23, %v2109_v49  ;;  %v3958_v49 = vpack.c.bf16 %v2414_v46, %v2412_v45  ;;  %v3996_v45 = vpack.c.bf16 %v2449_v48, %v2447_v44 }
 0xf6a   :  { %v2107_v53 = vpop.xlane.xlu1 %2106  ;;  %v2112_v57 = vmul.f32 %v2108_v18, %v2108_v18  ;;  %v2116_v1 = vsub.f32 %v2090_v24, %v2108_v18  ;;  %v2413_v18 = vld [vmem:[#allocation2 + $0xa0] sm:$0xff] }
 0xf6b   :  { %v2111_v55 = vmul.f32 0.03125, %v2107_v53  ;;  %v2104_v56 = vpop.xlane.xlu0 %2103  ;;  %v2416_v53 = vld [vmem:[#allocation2 + $0xb8] sm:$0xff] }
 0xf6c   :  { %v2110_v58 = vmul.f32 0.03125, %v2104_v56 }
 0xf6d   :  { %v2115_v22 = vsub.f32 %v2111_v55, %v2113_v54  ;;  %v2418_v54 = vld [vmem:[#allocation2 + $0xc8] sm:$0xff]  ;;  %v3960_v55 = vpack.c.bf16 %v2413_v18, %v2411_v52 }
 0xf6e   :  { %v2114_v59 = vsub.f32 %v2110_v58, %v2112_v57  ;;  %v3962_v56 = vpack.c.bf16 %v2418_v54, %v2416_v53  ;;  %v2415_v57 = vld [vmem:[#allocation2 + $0xb0] sm:$0xff]  ;;  %v2417_v58 = vld [vmem:[#allocation2 + $0xc0] sm:$0xff] }
 0xf6f   :  { %v2119_v60 = vadd.f32 1e-05, %v2115_v22  ;;  %v2420_v22 = vld [vmem:[#allocation2 + $0xd8] sm:$0xff] }
 0xf70   :  { %v2118_v61 = vadd.f32 1e-05, %v2114_v59  ;;  %v2422_v59 = vld [vmem:[#allocation2 + $0xe8] sm:$0xff] }
 0xf71   :  { %4176 = vrsqrt.f32 %v2119_v60  ;;  %v3964_v60 = vpack.c.bf16 %v2417_v58, %v2415_v57 }
 0xf72   :  { %4178 = vrsqrt.f32 %v2118_v61  ;;  %v3966_v61 = vpack.c.bf16 %v2422_v59, %v2420_v22 }
 0xf7b   :  { %v4177_v63 = vpop.eup %4176 }
 0xf7c   :  { %v4179_v39 = vpop.eup %4178  ;;  %v2123_v2 = vmul.f32 %v4177_v63, %v2117_v62  ;;  %v2419_v62 = vld [vmem:[#allocation2 + $0xd0] sm:$0xff]  ;;  %v2421_v63 = vld [vmem:[#allocation2 + $0xe0] sm:$0xff] }
 0xf7d   :  { %v2122_v3 = vmul.f32 %v4179_v39, %v2116_v1  ;;  %v2424_v1 = vld [vmem:[#allocation2 + $0xf8] sm:$0xff]  ;;  %v3968_v39 = vpack.c.bf16 %v2421_v63, %v2419_v62  ;;  %v2454_v62 = vld [vmem:[#allocation2 + $0x1e8] sm:$0xff] }
 0xf7e   :  { %v2129_v51 = vmul.f32 %v3235_v38, %v2123_v2 }
 0xf7f   :  { %v2128_v4 = vmul.f32 %v3235_v38, %v2122_v3  ;;  %v2426_v38 = vld [vmem:[#allocation2 + $0x108] sm:$0xff]  ;;  %v2423_v3 = vld [vmem:[#allocation2 + $0xf0] sm:$0xff] }
 0xf80   :  { %v2135_v8 = vadd.f32 %v3236_v50, %v2129_v51  ;;  %v3970_v2 = vpack.c.bf16 %v2426_v38, %v2424_v1  ;;  %v2428_v51 = vld [vmem:[#allocation2 + $0x118] sm:$0xff]  ;;  %v2451_v1 = vld [vmem:[#allocation2 + $0x1d0] sm:$0xff]  ;;  %v2453_v38 = vld [vmem:[#allocation2 + $0x1e0] sm:$0xff] }
 0xf81   :  { %v2134_v7 = vadd.f32 %v3236_v50, %v2128_v4  ;;  %v2425_v50 = vld [vmem:[#allocation2 + $0x100] sm:$0xff]  ;;  %v2430_v4 = vld [vmem:[#allocation2 + $0x128] sm:$0xff] }
 0xf83   :  { %3700 = vmatprep.mubr.msk.f32.mxu0 %vm265_vm1, %v2134_v7 }
 0xf84   :  { %3701 = vmatmul.mubr.msk.f32.vlgmr.msra.gmra.mrb[24].mxu0 %vm265_vm1, %v2135_v8 }
 0xf85   :  { %3953 = vmatpush1.bf16.msra.mxu0 %v3952_v42  ;;  %v3992_v42 = vpack.c.bf16 %v2445_v37, %v2443_v5  ;;  %v2395_v37 = vld [vmem:[#allocation2 + $0x30] sm:$0xff] }
 0xf86   :  { %3955 = vmatprep.subr.bf16.mxu0 %v3954_v43  ;;  %v3994_v43 = vpack.c.bf16 %v2450_v41, %v2448_v40  ;;  %v2396_v40 = vld [vmem:[#allocation2 + $0x38] sm:$0xff] }
 0xf89   :  { %3957 = vmatpush1.bf16.msra.mxu0 %v3956_v47 }
 0xf8a   :  { %3959 = vmatprep.subr.bf16.mxu0 %v3958_v49 }
 0xf8d   :  { %3961 = vmatpush1.bf16.msra.mxu0 %v3960_v55 }
 0xf8e   :  { %3963 = vmatprep.subr.bf16.mxu0 %v3962_v56 }
 0xf91   :  { %3965 = vmatpush1.bf16.msra.mxu0 %v3964_v60 }
 0xf92   :  { %3967 = vmatprep.subr.bf16.mxu0 %v3966_v61  ;;  %v2452_v61 = vld [vmem:[#allocation2 + $0x1d8] sm:$0xff] }
 0xf93   :  { %v3998_v63 = vpack.c.bf16 %v2454_v62, %v2452_v61 }
 0xf95   :  { %3969 = vmatpush1.bf16.msra.mxu0 %v3968_v39  ;;  %v4000_v39 = vpack.c.bf16 %v2453_v38, %v2451_v1  ;;  %v2635_v1 = vld [vmem:[#allocation5 + $0x480] sm:$0xff]  ;;  %v2636_v38 = vld [vmem:[#allocation5 + $0x488] sm:$0xff] }
 0xf96   :  { %3971 = vmatprep.subr.bf16.mxu0 %v3970_v2  ;;  %v2456_v2 = vld [vmem:[#allocation2 + $0x1f8] sm:$0xff] }
0x1057   :  { %v3702_v19 = vpop.f32.mrb[24].mxu0 }
0x1058   :  { %v2223_v26 = vadd.f32 %v3702_v19, %v3237_v12  ;;  %v2217_v13 = vpop.f32.mrb[25].mxu0  ;;  %v3976_v19 = vpack.c.bf16 %v2429_v10, %v2427_v9  ;;  %v3243_v10 = vld [vmem:[#allocation5 + $0x360] ss:$0 sm:$0xff] }
0x1059   :  { %v2218_v14 = vadd.f32 %v3237_v12, %v2217_v13  ;;  %v2434_v12 = vld [vmem:[#allocation2 + $0x148] sm:$0xff]  ;;  %v2431_v13 = vld [vmem:[#allocation2 + $0x130] sm:$0xff] }
0x105a   :  { %v2227_v16 = vmax.f32 %v2223_v26, 0.0  ;;  %v3978_v26 = vpack.c.bf16 %v2434_v12, %v2432_v11  ;;  %v2460_v11 = vld [vmem:[#allocation2 + $0x218] sm:$0xff]  ;;  %v2462_v12 = vld [vmem:[#allocation2 + $0x228] sm:$0xff] }
0x105b   :  { %v2226_v15 = vmax.f32 %v2218_v14, 0.0  ;;  %v2433_v14 = vld [vmem:[#allocation2 + $0x140] sm:$0xff] }
0x105d   :  { %3719 = vmatprep.mubr.msk.f32.mxu1 %vm1185_vm4, %v2226_v15  ;;  %v2436_v15 = vld [vmem:[#allocation2 + $0x158] sm:$0xff] }
0x105e   :  { %3720 = vmatmul.mubr.msk.f32.vlgmr.msra.gmra.mrb[24].mxu1 %vm1185_vm4, %v2227_v16  ;;  %v2438_v16 = vld [vmem:[#allocation2 + $0x168] sm:$0xff] }
0x105f   :  { %2626 = vmatprep.mubr.f32.mxu1 %v4266_v0 }
0x1131   :  { %v3721_v20 = vpop.f32.mrb[24].mxu1 }
0x1132   :  { %v2319_v21 = vadd.f32 %v3721_v20, %v3240_v17  ;;  %v2313_v23 = vpop.f32.mrb[25].mxu1  ;;  %v3982_v20 = vpack.c.bf16 %v2438_v16, %v2436_v15  ;;  %v3244_v15 = vld [vmem:[#allocation5 + $0x368] ss:$0 sm:$0xff] }
0x1133   :  { %v2314_v24 = vadd.f32 %v3240_v17, %v2313_v23  ;;  %v3980_v17 = vpack.c.bf16 %v2433_v14, %v2431_v13  ;;  %v2437_v23 = vld [vmem:[#allocation2 + $0x160] sm:$0xff]  ;;  %v2459_v13 = vld [vmem:[#allocation2 + $0x210] sm:$0xff] }
0x1134   :  { %v4517_v25 = vadd.f32 %v2319_v21, %v2135_v8  ;;  %v3974_v8 = vpack.c.bf16 %v2430_v4, %v2428_v51  ;;  %v2435_v21 = vld [vmem:[#allocation2 + $0x150] sm:$0xff]  ;;  %v2457_v4 = vld [vmem:[#allocation2 + $0x200] sm:$0xff] }
0x1135   :  { %v4519_v27 = vadd.f32 %v2314_v24, %v2134_v7  ;;  %v3972_v7 = vpack.c.bf16 %v2425_v50, %v2423_v3  ;;  %v2440_v24 = vld [vmem:[#allocation2 + $0x178] sm:$0xff]  ;;  %v2458_v3 = vld [vmem:[#allocation2 + $0x208] sm:$0xff]  ;;  %v2455_v51 = vld [vmem:[#allocation2 + $0x1f0] sm:$0xff] }
0x1136   :  { %v2333_v31 = vmul.f32 %v4517_v25, %v4517_v25  ;;  %v2329_v32 = vsel %vm265_vm1, %v4517_v25, 0.0  ;;  %v4002_v50 = vpack.c.bf16 %v2458_v3, %v2456_v2  ;;  %v2461_v14 = vld [vmem:[#allocation2 + $0x220] sm:$0xff]  ;;  %v2654_v2 = vld [vmem:[#allocation5 + $0x518] sm:$0xff] }
0x1137   :  { %v2326_v28 = vsel %vm265_vm1, %v4519_v27, 0.0  ;;  %v2332_v29 = vmul.f32 %v4519_v27, %v4519_v27  ;;  %3973 = vmatpush1.bf16.msra.mxu0 %v3972_v7  ;;  %v4004_v7 = vpack.c.bf16 %v2457_v4, %v2455_v51  ;;  %v4008_v16 = vpack.c.bf16 %v2461_v14, %v2459_v13  ;;  %v2544_v3 = vld [vmem:[#allocation5 + $0x3b0] sm:$0x3]  ;;  %v2658_v13 = vld [vmem:[#allocation5 + $0x538] sm:$0xff] }
0x1138   :  { %2327 = vadd.xlane.f32.xlu0 %v2326_v28  ;;  %v2337_v33 = vsel %vm265_vm1, %v2333_v31, 0.0  ;;  %3975 = vmatprep.subr.bf16.mxu0 %v3974_v8  ;;  %v2442_v28 = vld [vmem:[#allocation2 + $0x188] sm:$0xff]  ;;  %v2439_v31 = vld [vmem:[#allocation2 + $0x170] sm:$0xff]  ;;  %v2637_v4 = vld [vmem:[#allocation5 + $0x490] sm:$0xff] }
0x1139   :  { %v2334_v30 = vsel %vm265_vm1, %v2332_v29, 0.0  ;;  %v3984_v29 = vpack.c.bf16 %v2437_v23, %v2435_v21  ;;  %v2464_v23 = vld [vmem:[#allocation2 + $0x238] sm:$0xff] }
0x113a   :  { %2335 = vadd.xlane.f32.xlu1 %v2334_v30  ;;  %v3986_v30 = vpack.c.bf16 %v2442_v28, %v2440_v24 }
0x113b   :  { %3977 = vmatpush1.bf16.msra.mxu0 %v3976_v19 }
0x113c   :  { %2330 = vadd.xlane.f32.xlu0 %v2329_v32  ;;  %3979 = vmatprep.subr.bf16.mxu0 %v3978_v26  ;;  %v2441_v32 = vld [vmem:[#allocation2 + $0x180] sm:$0xff]  ;;  %v4006_v26 = vpack.c.bf16 %v2462_v12, %v2460_v11  ;;  %v2639_v12 = vld [vmem:[#allocation5 + $0x4a0] sm:$0xff] }
0x113d   :  { %v3988_v6 = vpack.c.bf16 %v2441_v32, %v2439_v31  ;;  %v2465_v31 = vld [vmem:[#allocation2 + $0x240] sm:$0xff] }
0x113e   :  { %2338 = vadd.xlane.f32.xlu1 %v2337_v33  ;;  %v2444_v33 = vld [vmem:[#allocation2 + $0x198] sm:$0xff] }
0x113f   :  { %3981 = vmatpush1.bf16.msra.mxu0 %v3980_v17  ;;  %v3990_v36 = vpack.c.bf16 %v2446_v35, %v2444_v33 }
0x1140   :  { %3983 = vmatprep.subr.bf16.mxu0 %v3982_v20 }
0x1143   :  { %3985 = vmatpush1.bf16.msra.mxu0 %v3984_v29 }
0x1144   :  { %3987 = vmatprep.subr.bf16.mxu0 %v3986_v30  ;;  %v2463_v30 = vld [vmem:[#allocation2 + $0x230] sm:$0xff] }
0x1145   :  { %v4012_v32 = vpack.c.bf16 %v2465_v31, %v2463_v30  ;;  %v2662_v30 = vld [vmem:[#allocation5 + $0x558] sm:$0xff] }
0x1147   :  { %3989 = vmatpush1.bf16.msra.mxu0 %v3988_v6 }
0x1148   :  { %3991 = vmatprep.subr.bf16.mxu0 %v3990_v36 }
0x114b   :  { %3993 = vmatpush1.bf16.msra.mxu0 %v3992_v42 }
0x114c   :  { %3995 = vmatprep.subr.bf16.mxu0 %v3994_v43 }
0x114f   :  { %3997 = vmatpush1.bf16.msra.mxu0 %v3996_v45 }
0x1150   :  { %3999 = vmatprep.subr.bf16.mxu0 %v3998_v63 }
0x1153   :  { %4001 = vmatpush1.bf16.msra.mxu0 %v4000_v39  ;;  %v2653_v39 = vld [vmem:[#allocation5 + $0x510] sm:$0xff] }
0x1154   :  { %4003 = vmatprep.subr.bf16.mxu0 %v4002_v50  ;;  %v4020_v50 = vpack.c.bf16 %v2636_v38, %v2635_v1  ;;  %v4022_v51 = vpack.c.bf16 %v2654_v2, %v2653_v39  ;;  %v2759_v1 = vld [vmem:[#allocation2 + $0x288] sm:$0xff]  ;;  %v2761_v38 = vld [vmem:[#allocation2 + $0x298] sm:$0xff] }
0x1157   :  { %4005 = vmatpush1.bf16.msra.mxu0 %v4004_v7  ;;  %v2638_v7 = vld [vmem:[#allocation5 + $0x498] sm:$0xff] }
0x1158   :  { %4007 = vmatprep.subr.bf16.mxu0 %v4006_v26  ;;  %v2657_v26 = vld [vmem:[#allocation5 + $0x530] sm:$0xff] }
0x115b   :  { %4009 = vmatpush1.bf16.msra.mxu0 %v4008_v16  ;;  %v2641_v16 = vld [vmem:[#allocation5 + $0x4b0] sm:$0xff] }
0x11c5   :  { %v2328_v46 = vpop.xlane.xlu0 %2327 }
0x11c6   :  { %v2340_v47 = vmul.f32 0.03125, %v2328_v46 }
0x11c7   :  { %v2336_v49 = vpop.xlane.xlu1 %2335 }
0x11c8   :  { %v2344_v52 = vmul.f32 %v2340_v47, %v2340_v47  ;;  %v2342_v18 = vmul.f32 0.03125, %v2336_v49  ;;  %v2348_v8 = vsub.f32 %v4519_v27, %v2340_v47  ;;  %v2466_v27 = vld [vmem:[#allocation2 + $0x248] sm:$0xff]  ;;  %v2397_v47 = vld [vmem:[#allocation2 + $0x40] sm:$0xff] }
0x11c9   :  { %v2331_v53 = vpop.xlane.xlu0 %2330  ;;  %v4010_v29 = vpack.c.bf16 %v2466_v27, %v2464_v23  ;;  %v2398_v49 = vld [vmem:[#allocation2 + $0x48] sm:$0xff] }
0x11ca   :  { %v2346_v54 = vsub.f32 %v2342_v18, %v2344_v52  ;;  %v2341_v55 = vmul.f32 0.03125, %v2331_v53 }
0x11cb   :  { %v2339_v56 = vpop.xlane.xlu1 %2338  ;;  %4011 = vmatprep.subr.bf16.mxu0 %v4010_v29  ;;  %v2661_v29 = vld [vmem:[#allocation5 + $0x550] sm:$0xff] }
0x11cc   :  { %v2350_v57 = vadd.f32 1e-05, %v2346_v54  ;;  %v2345_v58 = vmul.f32 %v2341_v55, %v2341_v55  ;;  %v2343_v22 = vmul.f32 0.03125, %v2339_v56  ;;  %v2349_v17 = vsub.f32 %v4517_v25, %v2341_v55  ;;  %4013 = vmatpush1.bf16.msra.mxu0 %v4012_v32 }
0x11cd   :  { %4098 = vmatprep.subr.bf16.mxu0 %v4267_v34  ;;  %v4038_v32 = vpack.c.bf16 %v2662_v30, %v2661_v29  ;;  %v2777_v29 = vld [vmem:[#allocation2 + $0x318] sm:$0xff] }
0x11ce   :  { %4180 = vrsqrt.f32 %v2350_v57  ;;  %v2347_v59 = vsub.f32 %v2343_v22, %v2345_v58  ;;  %v2651_v58 = vld [vmem:[#allocation5 + $0x500] sm:$0xff]  ;;  %v2652_v22 = vld [vmem:[#allocation5 + $0x508] sm:$0xff] }
0x11cf   :  { %v4018_v63 = vpack.c.bf16 %v2652_v22, %v2651_v58 }
0x11d0   :  { %v2351_v60 = vadd.f32 1e-05, %v2347_v59 }
0x11d2   :  { %4182 = vrsqrt.f32 %v2351_v60 }
0x11d8   :  { %v4181_v9 = vpop.eup %4180 }
0x11d9   :  { %v2354_v19 = vmul.f32 %v4181_v9, %v2348_v8  ;;  %v2655_v8 = vld [vmem:[#allocation5 + $0x520] sm:$0xff]  ;;  %v2656_v9 = vld [vmem:[#allocation5 + $0x528] sm:$0xff] }
0x11da   :  { %v4026_v11 = vpack.c.bf16 %v2656_v9, %v2655_v8  ;;  %v2765_v8 = vld [vmem:[#allocation2 + $0x2b8] sm:$0xff] }
0x11db   :  { %v2360_v20 = vmul.f32 %v3243_v10, %v2354_v19  ;;  %v2640_v19 = vld [vmem:[#allocation5 + $0x4a8] sm:$0xff] }
0x11dc   :  { %v4183_v21 = vpop.eup %4182  ;;  %v4028_v14 = vpack.c.bf16 %v2640_v19, %v2639_v12  ;;  %v2764_v12 = vld [vmem:[#allocation2 + $0x2b0] sm:$0xff]  ;;  %v2767_v19 = vld [vmem:[#allocation2 + $0x2c8] sm:$0xff] }
0x11dd   :  { %v2366_v24 = vadd.f32 %v3244_v15, %v2360_v20  ;;  %v2355_v28 = vmul.f32 %v4183_v21, %v2349_v17  ;;  %v2642_v17 = vld [vmem:[#allocation5 + $0x4b8] sm:$0xff]  ;;  %v2659_v20 = vld [vmem:[#allocation5 + $0x540] sm:$0xff]  ;;  %v2660_v21 = vld [vmem:[#allocation5 + $0x548] sm:$0xff] }
0x11de   :  { %v4032_v23 = vpack.c.bf16 %v2642_v17, %v2641_v16  ;;  %v4034_v27 = vpack.c.bf16 %v2660_v21, %v2659_v20  ;;  %v2768_v16 = vld [vmem:[#allocation2 + $0x2d0] sm:$0xff]  ;;  %v2771_v17 = vld [vmem:[#allocation2 + $0x2e8] sm:$0xff]  ;;  %v2773_v20 = vld [vmem:[#allocation2 + $0x2f8] sm:$0xff] }
0x11df   :  { %2370 = vrot.lane.b32.xlu0 %v2366_v24, %s4269_s0  ;;  %v2361_v33 = vmul.f32 %v3243_v10, %v2355_v28  ;;  %v4024_v10 = vpack.c.bf16 %v2638_v7, %v2637_v4  ;;  %v2644_v28 = vld [vmem:[#allocation5 + $0x4c8] sm:$0xff]  ;;  %v2760_v4 = vld [vmem:[#allocation2 + $0x290] sm:$0xff]  ;;  %v2763_v7 = vld [vmem:[#allocation2 + $0x2a8] sm:$0xff] }
0x11e1   :  { %v2367_v35 = vadd.f32 %v3244_v15, %v2361_v33  ;;  %v4030_v15 = vpack.c.bf16 %v2658_v13, %v2657_v26  ;;  %v2645_v33 = vld [vmem:[#allocation5 + $0x4d0] sm:$0xff]  ;;  %v2769_v26 = vld [vmem:[#allocation2 + $0x2d8] sm:$0xff] }
0x11e3   :  { %2378 = vrot.lane.b32.xlu0 %v2367_v35, %s4270_s15  ;;  %2372 = vrot.lane.b32.xlu1 %v2367_v35, %s4269_s0 }
0x11e7   :  { %2376 = vrot.lane.b32.xlu1 %v2366_v24, %s4270_s15 }
0x11eb   :  { %2382 = vrot.lane.b32.xlu1 %v2366_v24, %s4271_s16 }
0x11ef   :  { %2384 = vrot.lane.b32.xlu1 %v2367_v35, %s4271_s16 }
0x1251   :  { %v2371_v6 = vpop.permute.xlu0 %2370 }
0x1252   :  { %v2388_v5 = vsel %vm265_vm1, %v2366_v24, %v2371_v6  ;;  %v2643_v24 = vld [vmem:[#allocation5 + $0x4c0] sm:$0xff]  ;;  %v2664_v6 = vld [vmem:[#allocation5 + $0x568] sm:$0xff] }
0x1253   :  { %v4036_v31 = vpack.c.bf16 %v2644_v28, %v2643_v24  ;;  %v2772_v24 = vld [vmem:[#allocation2 + $0x2f0] sm:$0xff]  ;;  %v2775_v28 = vld [vmem:[#allocation2 + $0x308] sm:$0xff] }
0x1255   :  { %v2373_v25 = vpop.permute.xlu1 %2372  ;;  %v2379_v44 = vpop.permute.xlu0 %2378 }
0x1256   :  { %v2389_v43 = vsel %vm265_vm1, %v2367_v35, %v2373_v25  ;;  %v2646_v35 = vld [vmem:[#allocation5 + $0x4d8] sm:$0xff]  ;;  %v2663_v25 = vld [vmem:[#allocation5 + $0x560] sm:$0xff] }
0x1257   :  { %v2391_v52 = vsel %vm1185_vm4, %v2389_v43, %v2379_v44  ;;  %v2666_v43 = vld [vmem:[#allocation5 + $0x578] sm:$0xff] }
0x1259   :  { %v2377_v36 = vpop.permute.xlu1 %2376 }
0x125a   :  { %v2390_v41 = vsel %vm1185_vm4, %v2388_v5, %v2377_v36  ;;  %v4040_v36 = vpack.c.bf16 %v2646_v35, %v2645_v33  ;;  %v4042_v5 = vpack.c.bf16 %v2664_v6, %v2663_v25  ;;  %v2776_v33 = vld [vmem:[#allocation2 + $0x310] sm:$0xff]  ;;  %v2779_v35 = vld [vmem:[#allocation2 + $0x328] sm:$0xff]  ;;  %v2781_v25 = vld [vmem:[#allocation2 + $0x338] sm:$0xff] }
0x125d   :  { %v2383_v42 = vpop.permute.xlu1 %2382 }
0x125e   :  { %v2393_v48 = vsel %vm2392_vm5, %v2390_v41, %v2383_v42  ;;  %v2665_v42 = vld [vmem:[#allocation5 + $0x570] sm:$0xff] }
0x125f   :  { %v2399_v45 = vmul.f32 %v2395_v37, %v2393_v48  ;;  %v2400_v46 = vmul.f32 %v2396_v40, %v2393_v48  ;;  %v2647_v37 = vld [vmem:[#allocation5 + $0x4e0] sm:$0xff]  ;;  %v2648_v40 = vld [vmem:[#allocation5 + $0x4e8] sm:$0xff]  ;;  %v4046_v44 = vpack.c.bf16 %v2666_v43, %v2665_v42  ;;  %v2649_v48 = vld [vmem:[#allocation5 + $0x4f0] sm:$0xff] }
0x1260   :  { %v4044_v41 = vpack.c.bf16 %v2648_v40, %v2647_v37  ;;  %v2780_v37 = vld [vmem:[#allocation2 + $0x330] sm:$0xff]  ;;  %v2783_v40 = vld [vmem:[#allocation2 + $0x348] sm:$0xff] }
0x1261   :  { %v2385_v18 = vpop.permute.xlu1 %2384  ;;  %2531 = vmatprep.mubr.f32.mxu0 %v2400_v46 }
0x1262   :  { %v2394_v53 = vsel %vm2392_vm5, %v2391_v52, %v2385_v18  ;;  %2532 = vmatmul.mubr.f32.vlgmr.msra.gmra.mrb[26].mxu0 %v2399_v45  ;;  %v2650_v45 = vld [vmem:[#allocation5 + $0x4f8] sm:$0xff]  ;;  %v2548_v18 = vlaneseq }
0x1263   :  { %v2401_v54 = vmul.f32 %v2397_v47, %v2394_v53  ;;  %v2402_v55 = vmul.f32 %v2398_v49, %v2394_v53  ;;  %v4048_v46 = vpack.c.bf16 %v2650_v45, %v2649_v48  ;;  %v2755_v47 = vld [vmem:[#allocation2 + $0x268] sm:$0xff]  ;;  %v2757_v49 = vld [vmem:[#allocation2 + $0x278] sm:$0xff]  ;;  %v2784_v48 = vld [vmem:[#allocation2 + $0x350] sm:$0xff] }
0x1264   :  { %v4050_v52 = vpack.c.bf16 %v2757_v49, %v2755_v47  ;;  %v4540_v53 = vshrl.u32 %v2548_v18, 7  ;;  %v2787_v45 = vld [vmem:[#allocation2 + $0x368] sm:$0xff]  ;;  %v2788_v18 = vld [vmem:[#allocation2 + $0x370] sm:$0xff] }
0x1265   :  { %2537 = vmatprep.mubr.f32.mxu0 %v2402_v55  ;;  %v2546_v55 = vld [vmem:[#allocation2 + $0x250] ss:$8 sm:$0x3] }
0x1266   :  { %2538 = vmatmul.mubr.f32.gmra.mrb[28].mxu0 %v2401_v54  ;;  %v2550_v54 = vsub.s32 0, %v4540_v53 }
0x1335   :  { %v2533_v56 = vpop.f32.mrb[26].mxu0 }
0x1336   :  { %v2535_v57 = vpop.f32.mrb[27].mxu0 }
0x1339   :  { %v2539_v59 = vpop.f32.mrb[28].mxu0 }
0x133a   :  { %v4016_v60 = vpack.c.bf16 %v2539_v59, %v2533_v56  ;;  %v2541_v61 = vpop.f32.mrb[29].mxu0  ;;  %v2554_v56 = vsub.s32 1, %v4540_v53 }
0x133b   :  { %v4014_v62 = vpack.c.bf16 %v2541_v61, %v2535_v57  ;;  %v2551_v57 = vrot.slane %v2546_v55, %v2550_v54  ;;  %v2754_v61 = vld [vmem:[#allocation2 + $0x260] sm:$0xff] }
0x133c   :  { %v2555_v58 = vrot.slane %v2546_v55, %v2554_v56  ;;  %v2791_v55 = vld [vmem:[#allocation2 + $0x388] sm:$0xff] }
0x133d   :  { %4015 = vmatprep.subr.bf16.mxu1 %v4014_v62  ;;  %v2756_v62 = vld [vmem:[#allocation2 + $0x270] sm:$0xff] }
0x133e   :  { %4017 = vmatpush1.bf16.msra.mxu1 %v4016_v60  ;;  %v4052_v2 = vpack.c.bf16 %v2756_v62, %v2754_v61  ;;  %v2792_v61 = vld [vmem:[#allocation2 + $0x390] sm:$0xff]  ;;  %v2795_v62 = vld [vmem:[#allocation2 + $0x3a8] sm:$0xff] }
0x133f   :  { %4019 = vmatprep.subr.bf16.mxu1 %v4018_v63 }
0x1341   :  { %3245 = vmatmul.mubr.msk.f32.vlgmr.msra.gmra.mrb[26].mxu1 %vm2558_vm6, %v2544_v3 }
0x1342   :  { %4021 = vmatpush3.bf16.msra.mxu1 %v4020_v50  ;;  %v4054_v50 = vpack.c.bf16 %v2761_v38, %v2759_v1 }
0x1343   :  { %4023 = vmatprep.subr.bf16.mxu1 %v4022_v51  ;;  %v2758_v51 = vld [vmem:[#allocation2 + $0x280] sm:$0xff] }
0x1344   :  { %v4056_v9 = vpack.c.bf16 %v2760_v4, %v2758_v51  ;;  %v2801_v51 = vld [vmem:[#allocation2 + $0x3d8] sm:$0xff] }
0x1346   :  { %4025 = vmatpush3.bf16.msra.mxu1 %v4024_v10  ;;  %v4058_v10 = vpack.c.bf16 %v2765_v8, %v2763_v7  ;;  %v2798_v8 = vld [vmem:[#allocation2 + $0x3c0] sm:$0xff] }
0x1347   :  { %4027 = vmatprep.subr.bf16.mxu1 %v4026_v11  ;;  %v2762_v11 = vld [vmem:[#allocation2 + $0x2a0] sm:$0xff] }
0x1348   :  { %v4060_v13 = vpack.c.bf16 %v2764_v12, %v2762_v11  ;;  %v2891_v11 = vld [vmem:[#allocation5 + $0x3b8] sm:$0xff]  ;;  %v2892_v12 = vld [vmem:[#allocation5 + $0x3c0] sm:$0xff] }
0x134a   :  { %4029 = vmatpush3.bf16.msra.mxu1 %v4028_v14  ;;  %v4062_v14 = vpack.c.bf16 %v2769_v26, %v2767_v19  ;;  %v4099_v19 = vpack.c.bf16 %v2892_v12, %v2891_v11  ;;  %v2893_v26 = vld [vmem:[#allocation5 + $0x3c8] sm:$0xff]  ;;  %v3073_v11 = vld [vmem:[#allocation5 + $0x590] sm:$0xff]  ;;  %v3074_v12 = vld [vmem:[#allocation5 + $0x598] sm:$0xf] }
0x134b   :  { %4031 = vmatprep.subr.bf16.mxu1 %v4030_v15  ;;  %v2766_v15 = vld [vmem:[#allocation2 + $0x2c0] sm:$0xff] }
0x134c   :  { %v4064_v21 = vpack.c.bf16 %v2768_v16, %v2766_v15  ;;  %4100 = vmatpush1.bf16.msra.mxu0 %v4099_v19  ;;  %v2896_v16 = vld [vmem:[#allocation5 + $0x3e0] sm:$0xff]  ;;  %v4135_v19 = vpack.c.bf16 %v3074_v12, %v3073_v11 }
0x134d   :  { %4101 = vmatprep.subr.bf16.mxu0 %v4267_v34 }
0x134e   :  { %4033 = vmatpush3.bf16.msra.mxu1 %v4032_v23  ;;  %v4066_v23 = vpack.c.bf16 %v2773_v20, %v2771_v17 }
0x134f   :  { %4035 = vmatprep.subr.bf16.mxu1 %v4034_v27  ;;  %v2770_v27 = vld [vmem:[#allocation2 + $0x2e0] sm:$0xff] }
0x1350   :  { %v4068_v30 = vpack.c.bf16 %v2772_v24, %v2770_v27  ;;  %v2901_v24 = vld [vmem:[#allocation5 + $0x408] sm:$0xff] }
0x1352   :  { %4037 = vmatpush3.bf16.msra.mxu1 %v4036_v31  ;;  %v4070_v31 = vpack.c.bf16 %v2777_v29, %v2775_v28  ;;  %v2902_v28 = vld [vmem:[#allocation5 + $0x410] sm:$0xff] }
0x1353   :  { %4039 = vmatprep.subr.bf16.mxu1 %v4038_v32  ;;  %v2774_v32 = vld [vmem:[#allocation2 + $0x300] sm:$0xff]  ;;  %v4114_v29 = vpack.c.bf16 %v2902_v28, %v2901_v24 }
0x1354   :  { %v4072_v6 = vpack.c.bf16 %v2776_v33, %v2774_v32  ;;  %v2905_v33 = vld [vmem:[#allocation5 + $0x428] sm:$0xff] }
0x1356   :  { %4041 = vmatpush3.bf16.msra.mxu1 %v4040_v36  ;;  %v4074_v36 = vpack.c.bf16 %v2781_v25, %v2779_v35  ;;  %v2906_v35 = vld [vmem:[#allocation5 + $0x430] sm:$0xff] }
0x1357   :  { %4043 = vmatprep.subr.bf16.mxu1 %v4042_v5  ;;  %v2778_v5 = vld [vmem:[#allocation2 + $0x320] sm:$0xff]  ;;  %v4120_v25 = vpack.c.bf16 %v2906_v35, %v2905_v33 }
0x1358   :  { %v4076_v42 = vpack.c.bf16 %v2780_v37, %v2778_v5  ;;  %v2909_v37 = vld [vmem:[#allocation5 + $0x448] sm:$0xff] }
0x135a   :  { %4045 = vmatpush3.bf16.msra.mxu1 %v4044_v41  ;;  %v2785_v41 = vld [vmem:[#allocation2 + $0x358] sm:$0xff] }
0x135b   :  { %4047 = vmatprep.subr.bf16.mxu1 %v4046_v44  ;;  %v4078_v43 = vpack.c.bf16 %v2785_v41, %v2783_v40  ;;  %v2782_v44 = vld [vmem:[#allocation2 + $0x340] sm:$0xff] }
0x135c   :  { %v4080_v47 = vpack.c.bf16 %v2784_v48, %v2782_v44  ;;  %v2910_v40 = vld [vmem:[#allocation5 + $0x450] sm:$0xff]  ;;  %v2913_v48 = vld [vmem:[#allocation5 + $0x468] sm:$0xff] }
0x135d   :  { %v4126_v41 = vpack.c.bf16 %v2910_v40, %v2909_v37 }
0x135e   :  { %4049 = vmatpush3.bf16.msra.mxu1 %v4048_v46  ;;  %v2789_v46 = vld [vmem:[#allocation2 + $0x378] sm:$0xff] }
0x135f   :  { %4051 = vmatprep.subr.bf16.mxu1 %v4050_v52  ;;  %v4082_v49 = vpack.c.bf16 %v2789_v46, %v2787_v45  ;;  %v2786_v52 = vld [vmem:[#allocation2 + $0x360] sm:$0xff] }
0x1360   :  { %v2914_v45 = vld [vmem:[#allocation5 + $0x470] sm:$0xff] }
0x1361   :  { %v4132_v46 = vpack.c.bf16 %v2914_v45, %v2913_v48 }
0x1414   :  { %v2628_v22 = vpop.f32.mrb[26].mxu1 }
0x1415   :  { %v4548_v59 = vadd.f32 %v2628_v22, %v2551_v57  ;;  %v2630_v60 = vpop.f32.mrb[27].mxu1  ;;  %v2793_v57 = vld [vmem:[#allocation2 + $0x398] sm:$0xff] }
0x1416   :  { %v2631_v63 = vadd.f32 %v2630_v60, %v2555_v58  ;;  %v4084_v58 = vpack.c.bf16 %v2788_v18, %v2786_v52  ;;  %v4086_v22 = vpack.c.bf16 %v2793_v57, %v2791_v55  ;;  %v2790_v60 = vld [vmem:[#allocation2 + $0x380] sm:$0xff]  ;;  %v3246_v52 = vld [vmem:[#allocation5 + $0x580] ss:$0 sm:$0xff] }
0x1417   :  { %v2633_v3 = vmax.f32 %v4548_v59, 0.0  ;;  %v4088_v1 = vpack.c.bf16 %v2792_v61, %v2790_v60  ;;  %v2897_v59 = vld [vmem:[#allocation5 + $0x3e8] sm:$0xff] }
0x1418   :  { %v2634_v39 = vmax.f32 %v2631_v63, 0.0  ;;  %v2797_v63 = vld [vmem:[#allocation2 + $0x3b8] sm:$0xff] }
0x1419   :  { %v4090_v38 = vpack.c.bf16 %v2797_v63, %v2795_v62 }
0x141a   :  { %2736 = vmatprep.mubr.f32.mxu1 %v2634_v39 }
0x141b   :  { %2737 = vmatmul.mubr.f32.vlgmr.msra.gmra.mrb[28].mxu1 %v2633_v3 }
0x141c   :  { %4053 = vmatpush1.bf16.msra.mxu1 %v4052_v2  ;;  %3247 = vmatprep.mubr.msk.f32.mxu1 %vm1185_vm4, %v2634_v39  ;;  %v2794_v39 = vld [vmem:[#allocation2 + $0x3a0] sm:$0xff]  ;;  %v2796_v2 = vld [vmem:[#allocation2 + $0x3b0] sm:$0xff] }
0x141d   :  { %4055 = vmatprep.subr.bf16.mxu1 %v4054_v50  ;;  %v2799_v50 = vld [vmem:[#allocation2 + $0x3c8] sm:$0xff]  ;;  %v4092_v4 = vpack.c.bf16 %v2796_v2, %v2794_v39 }
0x141e   :  { %v4094_v7 = vpack.c.bf16 %v2801_v51, %v2799_v50 }
0x1420   :  { %4057 = vmatpush1.bf16.msra.mxu1 %v4056_v9  ;;  %v2800_v9 = vld [vmem:[#allocation2 + $0x3d0] sm:$0xff] }
0x1421   :  { %4059 = vmatprep.subr.bf16.mxu1 %v4058_v10  ;;  %v4096_v10 = vpack.c.bf16 %v2800_v9, %v2798_v8 }
0x1424   :  { %4061 = vmatpush1.bf16.msra.mxu1 %v4060_v13  ;;  %v2894_v13 = vld [vmem:[#allocation5 + $0x3d0] sm:$0xff] }
0x1425   :  { %4063 = vmatprep.subr.bf16.mxu1 %v4062_v14  ;;  %v2895_v14 = vld [vmem:[#allocation5 + $0x3d8] sm:$0xff]  ;;  %v4102_v15 = vpack.c.bf16 %v2894_v13, %v2893_v26 }
0x1426   :  { %v4105_v17 = vpack.c.bf16 %v2896_v16, %v2895_v14  ;;  %v3248_v26 = vld [vmem:[#allocation5 + $0x478] ss:$0 sm:$0xff] }
0x1427   :  { %4103 = vmatpush1.bf16.msra.mxu0 %v4102_v15 }
0x1428   :  { %4065 = vmatpush1.bf16.msra.mxu1 %v4064_v21  ;;  %4104 = vmatprep.subr.bf16.mxu0 %v4267_v34  ;;  %v2899_v21 = vld [vmem:[#allocation5 + $0x3f8] sm:$0xff] }
0x1429   :  { %4067 = vmatprep.subr.bf16.mxu1 %v4066_v23  ;;  %v2900_v23 = vld [vmem:[#allocation5 + $0x400] sm:$0xff] }
0x142a   :  { %v4111_v27 = vpack.c.bf16 %v2900_v23, %v2899_v21 }
0x142b   :  { %4106 = vmatpush1.bf16.msra.mxu0 %v4105_v17 }
0x142c   :  { %4069 = vmatpush1.bf16.msra.mxu1 %v4068_v30  ;;  %4107 = vmatprep.subr.bf16.mxu0 %v4267_v34  ;;  %v2903_v30 = vld [vmem:[#allocation5 + $0x418] sm:$0xff] }
0x142d   :  { %4071 = vmatprep.subr.bf16.mxu1 %v4070_v31  ;;  %v2904_v31 = vld [vmem:[#allocation5 + $0x420] sm:$0xff] }
0x142e   :  { %v4117_v32 = vpack.c.bf16 %v2904_v31, %v2903_v30 }
0x1430   :  { %4073 = vmatpush1.bf16.msra.mxu1 %v4072_v6  ;;  %v2907_v6 = vld [vmem:[#allocation5 + $0x438] sm:$0xff] }
0x1431   :  { %4075 = vmatprep.subr.bf16.mxu1 %v4074_v36  ;;  %v2908_v36 = vld [vmem:[#allocation5 + $0x440] sm:$0xff] }
0x1432   :  { %v4123_v5 = vpack.c.bf16 %v2908_v36, %v2907_v6 }
0x1434   :  { %4077 = vmatpush1.bf16.msra.mxu1 %v4076_v42  ;;  %v2911_v42 = vld [vmem:[#allocation5 + $0x458] sm:$0xff] }
0x1435   :  { %4079 = vmatprep.subr.bf16.mxu1 %v4078_v43  ;;  %v2912_v43 = vld [vmem:[#allocation5 + $0x460] sm:$0xff] }
0x1436   :  { %v4129_v44 = vpack.c.bf16 %v2912_v43, %v2911_v42 }
0x1438   :  { %4081 = vmatpush1.bf16.msra.mxu1 %v4080_v47 }
0x1439   :  { %4083 = vmatprep.subr.bf16.mxu1 %v4082_v49 }
0x143c   :  { %4085 = vmatpush1.bf16.msra.mxu1 %v4084_v58  ;;  %v2803_v58 = vld [vmem:[#allocation2 + $0x3e0] ss:$8 sm:$0x3] }
0x143d   :  { %4087 = vmatprep.subr.bf16.mxu1 %v4086_v22  ;;  %v2808_v22 = vrot.slane %v2803_v58, %v2550_v54  ;;  %v2812_v60 = vrot.slane %v2803_v58, %v2554_v56  ;;  %v2993_v54 = vld [vmem:[#allocation5 + $0x588] sm:$0x7] }
0x1440   :  { %4089 = vmatpush1.bf16.msra.mxu1 %v4088_v1 }
0x1441   :  { %4091 = vmatprep.subr.bf16.mxu1 %v4090_v38 }
0x1444   :  { %4093 = vmatpush1.bf16.msra.mxu1 %v4092_v4 }
0x1445   :  { %4095 = vmatprep.subr.bf16.mxu1 %v4094_v7 }
0x1448   :  { %4097 = vmatpush1.bf16.msra.mxu1 %v4096_v10 }
0x1449   :  { %3722 = vmatprep.subr.mxu1 %v4266_v0 }
0x144b   :  { %2883 = vmatmul.mubr.f32.vlgmr.msra.gmra.mrb[30].mxu1 %v2633_v3  ;;  %v2898_v3 = vld [vmem:[#allocation5 + $0x3f0] sm:$0xff] }
0x144c   :  { %3724 = vmatprep.mubr.msk.f32.mxu1 %vm4268_vm2, %v4266_v0  ;;  %v4108_v20 = vpack.c.bf16 %v2898_v3, %v2897_v59  ;;  %3723 = vmatpush3.msk.msra.mxu1 %vm2998_vm8, %v2993_v54 }
0x144d   :  { %4134 = vmatprep.subr.bf16.mxu1 %v4267_v34 }
0x144e   :  { %4109 = vmatpush1.bf16.msra.mxu0 %v4108_v20 }
0x144f   :  { %4110 = vmatprep.subr.bf16.mxu0 %v4267_v34 }
0x1452   :  { %4112 = vmatpush1.bf16.msra.mxu0 %v4111_v27 }
0x1453   :  { %4113 = vmatprep.subr.bf16.mxu0 %v4267_v34 }
0x1456   :  { %4115 = vmatpush1.bf16.msra.mxu0 %v4114_v29 }
0x1457   :  { %4116 = vmatprep.subr.bf16.mxu0 %v4267_v34 }
0x145a   :  { %4118 = vmatpush1.bf16.msra.mxu0 %v4117_v32 }
0x145b   :  { %4119 = vmatprep.subr.bf16.mxu0 %v4267_v34 }
0x145e   :  { %4121 = vmatpush1.bf16.msra.mxu0 %v4120_v25 }
0x145f   :  { %4122 = vmatprep.subr.bf16.mxu0 %v4267_v34 }
0x1462   :  { %4124 = vmatpush1.bf16.msra.mxu0 %v4123_v5 }
0x1463   :  { %4125 = vmatprep.subr.bf16.mxu0 %v4267_v34 }
0x1466   :  { %4127 = vmatpush1.bf16.msra.mxu0 %v4126_v41 }
0x1467   :  { %4128 = vmatprep.subr.bf16.mxu0 %v4267_v34 }
0x146a   :  { %4130 = vmatpush1.bf16.msra.mxu0 %v4129_v44 }
0x146b   :  { %4131 = vmatprep.subr.bf16.mxu0 %v4267_v34 }
0x146e   :  { %4133 = vmatpush1.bf16.msra.mxu0 %v4132_v46 }
0x14ee   :  { %v3456_v47 = vpop.f32.mrb[28].mxu1 }
0x14ef   :  { %v3457_v49 = vpop.f32.mrb[29].mxu1 }
0x14f0   :  { %v3458_v18 = vadd.f32 %v3457_v49, %v3456_v47 }
0x14f2   :  { %v2739_v55 = vadd.f32 %v3458_v18, %v3246_v52 }
0x14f4   :  { %v2743_v57 = vsel %vm2742_vm7, %v2739_v55, -inf }
0x14f5   :  { %2744 = vmax.xlane.f32.xlu0 %v2743_v57 }
0x151e   :  { %v2884_v61 = vpop.f32.mrb[30].mxu1 }
0x151f   :  { %v2885_v62 = vadd.f32 %v2884_v61, %v2808_v22  ;;  %v2886_v63 = vpop.f32.mrb[31].mxu1 }
0x1520   :  { %v2887_v1 = vadd.f32 %v2886_v63, %v2812_v60 }
0x1521   :  { %v2889_v39 = vmax.f32 %v2885_v62, 0.0 }
0x1522   :  { %v2890_v38 = vmax.f32 %v2887_v1, 0.0 }
0x1524   :  { %3249 = vmatprep.mubr.msk.f32.mxu0 %vm1185_vm4, %v2890_v38 }
0x1525   :  { %2988 = vmatmul.mubr.f32.vlgmr.msra.gmra.mrb[30].mxu0 %v2889_v39 }
0x1582   :  { %v2745_v2 = vpop.xlane.xlu0 %2744 }
0x1583   :  { %v2746_v50 = vsub.f32 %v2739_v55, %v2745_v2 }
0x1585   :  { %v2747_v51 = vmul.f32 1.442695, %v2746_v50 }
0x1587   :  { %4184 = vpow2.f32 %v2747_v51 }
0x1591   :  { %v4185_v4 = vpop.eup %4184 }
0x1592   :  { %v2749_v7 = vsel %vm2742_vm7, %v4185_v4, 0.0 }
0x1593   :  { %2750 = vadd.xlane.f32.xlu1 %v2749_v7 }
0x15f8   :  { %v2989_v53 = vpop.f32.mrb[30].mxu0 }
0x15f9   :  { %v2991_v56 = vpop.f32.mrb[31].mxu0  ;;  %v2990_v34 = vadd.f32 %v3248_v26, %v2989_v53 }
0x1620   :  { %v2751_v8 = vpop.xlane.xlu1 %2750 }
0x1621   :  { %4186 = vrcp.f32 %v2751_v8 }
0x162b   :  { %v4187_v9 = vpop.eup %4186 }
0x162c   :  { %v2753_v10 = vmul.f32 %v4187_v9, %v4185_v4 }
0x162e   :  { %3725 = vmatmul.mubr.msk.f32.vlgmr.msra.gmra.mrb[32].mxu1 %vm2994_vm9, %v2753_v10 }
0x162f   :  { %3731 = vmatprep.mubr.msk.f32.mxu1 %vm4268_vm2, %v4266_v0  ;;  %4137 = vmatpush3.bf16.msk.msra.mxu1 %vm4136_vm12, %v4135_v19 }
0x1701   :  { %v3068_v13 = vpop.f32.mrb[32].mxu1 }
0x1702   :  { %v3072_v14 = vmul.f32 %v3068_v13, %v2990_v34  ;;  %v3726_v15 = vpop.f32.mrb[33].mxu1 }
0x1704   :  { %3732 = vmatmul.mubr.msk.f32.vlgmr.msra.gmra.mrb[34].mxu1 %vm3075_vm13, %v3072_v14 }
0x17d7   :  { %v3149_v16 = vpop.f32.mrb[34].mxu1 }
0x17d8   :  { %v3733_v0 = vpop.f32.mrb[35].mxu1  ;;  %3154 = vst.msk [vmem:[#allocation7] sm:$0x3] %vm3153_vm14, %v3149_v16 }
0x17d9   :  { %4243 = shalt.err (!%p4240_p6)
}
0x17da   :  { %s4244_s22 = scalar_lea.hbm %s4595_s3, 32 }
0x17db   :  { %p4245_p7 = scmp.ne.s32.totalorder %s4595_s3, %s4244_s22  ;;  %p4248_p8 = scmp.lt.u32.totalorder %s4244_s22, %s4595_s3 }
0x17dd   :  { %p4250_p9 = pnand %p4248_p8, %p4245_p7 }
0x17df   :  { %4253 = shalt.err (!%p4250_p9)
}
0x17e0   :  { %3164 = dma.vmem_to_hbm [thread:$0]  %s3162_s18, 32, %s4595_s3, [#allocation4]  }
0x17e1   :  { %4258 = dma.done.wait [#allocation4], 32  }
0x17e2   :  { %4259 = vsyncadd [#allocation4], 4294967264 }
0x17e3   :  { %3168 = vsyncpa [#allocation3], 1 }
0x17e4   :  { %3169 = vsyncpa [#allocation6], 1 }
0x17e5   :  { %3170 = vsyncpa [#allocation4], 1 }

</bundles_post_ra>
